<compile_context>
chip_gen: v6e
topology: v6e:2x2x1
jax: 0.10.0
libtpu: 0.0.40
codegen_flags: <defaults>
</compile_context>

<pallas_src>
import functools

import jax
import jax.numpy as jnp
import numpy as np
from jax.experimental import pallas as pl
from jax.experimental.pallas import tpu as pltpu

PATCH = 4
EMBED_DIM = 128        # swin_base patch-embed dim
FEAT_DIM = 1024        # swin_base final feature dim
NUM_CLASSES = 2
HEAD_PAD = 128         # lane-padded head width; real logits are cols [:NUM_CLASSES]
LN_EPS = 1e-5


# ----------------------------------------------------------------------------
# Generation-aware sizing helpers (trace-time Python)
# ----------------------------------------------------------------------------
def _vmem_limit_bytes():
    cap = 64 * 1024 * 1024  # conservative default (v7x per-TC VMEM)
    try:
        info = pltpu.get_tpu_info()
        c = int(getattr(info, "vmem_capacity_bytes", 0) or 0)
        if c > 0:
            cap = c
    except Exception:
        pass
    # leave ~16 MiB headroom for compiler temps / layouts
    return max(32 * 1024 * 1024, min(cap - 16 * 1024 * 1024, 112 * 1024 * 1024))


def _pick_batch_tile(batch):
    # Largest divisor of B that is <= 8 while keeping >= 2 batch grid steps
    # (megacore) whenever B >= 2.  Divisor => no batch padding / HBM copy.
    best = 1
    for tb in range(1, min(batch, 8) + 1):
        if batch % tb == 0 and (batch // tb >= 2 or batch == 1):
            best = tb
    return best


def _pick_token_tile(n_tok, tb, p_dim, act_budget_bytes):
    # Per-token VMEM: double-buffered bf16 patches + ~2 live f32 FEAT_DIM copies.
    per_tok = tb * (2 * 2 * p_dim + 2 * 4 * FEAT_DIM)
    max_tok = max(8, act_budget_bytes // per_tok)
    # Prefer >= 2 token steps so the patches DMA actually pipelines.
    cap = min(max_tok, n_tok if n_tok < 16 else max(8, n_tok // 2))
    best = None
    for d in range(8, n_tok + 1, 8):
        if n_tok % d == 0 and d <= cap:
            best = d
    return best if best is not None else n_tok


# ----------------------------------------------------------------------------
# Fused kernel: (patch-embed + stage stub) matmul -> LayerNorm -> GAP accum
#               -> @last token step: head matmul -> store
# ----------------------------------------------------------------------------
def _swin_kernel(patches_ref, w_ref, b_ref, g_ref, beta_ref, wh_ref, bh_ref,
                 o_ref, acc_ref, *, inv_n_tok):
    t = pl.program_id(1)

    @pl.when(t == 0)
    def _():
        acc_ref[...] = jnp.zeros_like(acc_ref)

    # Fused patch-embed + stage-stub linear projection (bf16 in, f32 MXU accum).
    # TODO(synk): swin_base transformer stages (shifted-window attention, patch
    # merging) are not implemented; stubbed with one token-wise linear layer.
    x = jnp.einsum("btp,pf->btf", patches_ref[...], w_ref[...],
                   preferred_element_type=jnp.float32) + b_ref[...]

    # Final LayerNorm over the feature (lane) axis.
    mu = jnp.mean(x, axis=-1, keepdims=True)
    var = jnp.mean(jnp.square(x - mu), axis=-1, keepdims=True)
    x = (x - mu) * jax.lax.rsqrt(var + LN_EPS) * g_ref[...] + beta_ref[...]

    # Global-average-pool partial sum over this token tile.
    acc_ref[...] += jnp.sum(x, axis=1)

    @pl.when(t == pl.num_programs(1) - 1)
    def _():
        feat = acc_ref[...] * inv_n_tok                       # (tb, FEAT_DIM)
        logits = jnp.dot(feat.astype(jnp.bfloat16), wh_ref[...],
                         preferred_element_type=jnp.float32) + bh_ref[...]
        o_ref[...] = logits[None]                             # (1, tb, HEAD_PAD)


# ----------------------------------------------------------------------------
# Wrapper-side glue
# ----------------------------------------------------------------------------
def _extract_patches(x_nchw):
    # im2col patch extraction (XLA glue), fused bf16 cast (kernel casts anyway,
    # so this is numerically identical but halves HBM read traffic).
    B, C, H, W = x_nchw.shape
    hp, wp = H // PATCH, W // PATCH
    patches = jnp.transpose(
        x_nchw.reshape(B, C, hp, PATCH, wp, PATCH), (0, 2, 4, 1, 3, 5)
    ).reshape(B, hp * wp, C * PATCH * PATCH)
    return patches.astype(jnp.bfloat16)


def _fold_stage_params(params):
    # TODO(synk): patch-embed is algebraically folded into the linear stage
    # stub (w_comb = w_pe @ w_stage); remove this fold when real Swin stages
    # replace the stub.
    w_pe = params["w_pe"].astype(jnp.float32)
    w_st = params["w_stage"].astype(jnp.float32)
    w_comb = jnp.dot(w_pe, w_st).astype(jnp.bfloat16)
    b_comb = (jnp.dot(params["b_pe"].astype(jnp.float32), w_st)
              + params["b_stage"]).astype(jnp.float32)
    return w_comb, b_comb


@jax.jit
def swin_deepfake_forward(x_nchw, params):
    B, C, H, W = x_nchw.shape
    n_tok = (H // PATCH) * (W // PATCH)
    p_dim = C * PATCH * PATCH

    patches = _extract_patches(x_nchw)                 # (B, n_tok, p_dim) bf16
    w_comb, b_comb = _fold_stage_params(params)

    tb = _pick_batch_tile(B)
    grid_b = B // tb
    vmem_limit = _vmem_limit_bytes()
    tok_tile = _pick_token_tile(n_tok, tb, p_dim, vmem_limit // 3)
    grid_t = n_tok // tok_tile

    flops = 2 * B * n_tok * p_dim * FEAT_DIM + 2 * B * FEAT_DIM * HEAD_PAD
    bytes_accessed = (patches.size * patches.dtype.itemsize
                      + w_comb.size * 2 + b_comb.size * 4
                      + params["ln_g"].size * 4 + params["ln_b"].size * 4
                      + params["w_head"].size * 2 + params["b_head"].size * 4
                      + B * HEAD_PAD * 4)

    resident = lambda b, t: (0, 0)
    kernel = functools.partial(_swin_kernel, inv_n_tok=float(1.0 / n_tok))

    out = pl.pallas_call(
        kernel,
        out_shape=jax.ShapeDtypeStruct((grid_b, tb, HEAD_PAD), jnp.float32),
        grid_spec=pltpu.PrefetchScalarGridSpec(
            num_scalar_prefetch=0,
            grid=(grid_b, grid_t),
            in_specs=[
                pl.BlockSpec((tb, tok_tile, p_dim), lambda b, t: (b, t, 0)),
                pl.BlockSpec((p_dim, FEAT_DIM), resident),     # fused pe+stage W
                pl.BlockSpec((1, FEAT_DIM), resident),         # fused bias
                pl.BlockSpec((1, FEAT_DIM), resident),         # LN gamma
                pl.BlockSpec((1, FEAT_DIM), resident),         # LN beta
                pl.BlockSpec((FEAT_DIM, HEAD_PAD), resident),  # head W (padded)
                pl.BlockSpec((1, HEAD_PAD), resident),         # head bias
            ],
            out_specs=pl.BlockSpec((1, tb, HEAD_PAD), lambda b, t: (b, 0, 0)),
            scratch_shapes=[pltpu.VMEM((tb, FEAT_DIM), jnp.float32)],
        ),
        compiler_params=pltpu.CompilerParams(
            dimension_semantics=("parallel", "arbitrary"),
            vmem_limit_bytes=vmem_limit,
        ),
        cost_estimate=pl.CostEstimate(
            flops=flops,
            transcendentals=B * n_tok,
            bytes_accessed=bytes_accessed,
        ),
    )(patches, w_comb, b_comb, params["ln_g"], params["ln_b"],
      params["w_head"], params["b_head"])

    return out.reshape(B, HEAD_PAD)[:, :NUM_CLASSES]


# ----------------------------------------------------------------------------
# Parameter init (xavier_uniform weights, zero biases — matches _init_weights)
# ----------------------------------------------------------------------------
def xavier_uniform(key, fan_in, fan_out, dtype=jnp.float32):
    limit = float(np.sqrt(6.0 / (fan_in + fan_out)))
    w = jax.random.uniform(key, (fan_in, fan_out), jnp.float32, -limit, limit)
    return w.astype(dtype)


def init_params(key, in_channels=3):
    p_dim = in_channels * PATCH * PATCH
    k = jax.random.split(key, 3)
    w_head = jnp.zeros((FEAT_DIM, HEAD_PAD), jnp.float32)
    w_head = w_head.at[:, :NUM_CLASSES].set(
        xavier_uniform(k[2], FEAT_DIM, NUM_CLASSES))
    return {
        "w_pe":    xavier_uniform(k[0], p_dim, EMBED_DIM, jnp.bfloat16),
        "b_pe":    jnp.zeros((1, EMBED_DIM), jnp.float32),
        "w_stage": xavier_uniform(k[1], EMBED_DIM, FEAT_DIM, jnp.bfloat16),
        "b_stage": jnp.zeros((1, FEAT_DIM), jnp.float32),
        "ln_g":    jnp.ones((1, FEAT_DIM), jnp.float32),
        "ln_b":    jnp.zeros((1, FEAT_DIM), jnp.float32),
        "w_head":  w_head.astype(jnp.bfloat16),
        "b_head":  jnp.zeros((1, HEAD_PAD), jnp.float32),
    }


# ----------------------------------------------------------------------------
# Pure-JAX reference (same folded weights / bf16 casts / f32 accumulation)
# ----------------------------------------------------------------------------
def _reference_forward(x_nchw, params):
    patches = _extract_patches(x_nchw)
    w_comb, b_comb = _fold_stage_params(params)
    x = jnp.einsum("btp,pf->btf", patches, w_comb,
                   preferred_element_type=jnp.float32) + b_comb
    mu = jnp.mean(x, axis=-1, keepdims=True)
    var = jnp.mean(jnp.square(x - mu), axis=-1, keepdims=True)
    x = (x - mu) * jax.lax.rsqrt(var + LN_EPS) * params["ln_g"] + params["ln_b"]
    feat = jnp.mean(x, axis=1)
    logits = jnp.dot(feat.astype(jnp.bfloat16), params["w_head"],
                     preferred_element_type=jnp.float32) + params["b_head"]
    return logits[:, :NUM_CLASSES]


if __name__ == "__main__":
    key = jax.random.PRNGKey(0)
    k_x, k_p = jax.random.split(key)

    B, C, H, W = 2, 3, 32, 32            # small image consistent with the module
    x = jax.random.normal(k_x, (B, C, H, W), jnp.float32)    # NCHW, as in PyTorch
    params = init_params(k_p, in_channels=C)

    out = jax.block_until_ready(swin_deepfake_forward(x, params))
    assert out.shape == (B, NUM_CLASSES), out.shape

    ref = _reference_forward(x, params)
    np.testing.assert_allclose(np.asarray(out), np.asarray(ref),
                               rtol=1e-3, atol=1e-3)
    print("KERNEL_OK")
</pallas_src>

<mosaic_0001>
module attributes {stable_mosaic.version = 11 : i64} {
  func.func @_swin_kernel(%arg0: i32, %arg1: i32, %arg2: memref<1x32x48xbf16, #tpu.memory_space<vmem>>, %arg3: memref<48x1024xbf16, #tpu.memory_space<vmem>>, %arg4: memref<1x1024xf32, #tpu.memory_space<vmem>>, %arg5: memref<1x1024xf32, #tpu.memory_space<vmem>>, %arg6: memref<1x1024xf32, #tpu.memory_space<vmem>>, %arg7: memref<1024x128xbf16, #tpu.memory_space<vmem>>, %arg8: memref<1x128xf32, #tpu.memory_space<vmem>>, %arg9: memref<1x1x128xf32, #tpu.memory_space<vmem>>, %arg10: memref<1x1024xf32, #tpu.memory_space<vmem>>) attributes {dimension_semantics = [#tpu.dimension_semantics<parallel>, #tpu.dimension_semantics<arbitrary>], iteration_bounds = array<i64: 2, 2>, scalar_prefetch = 0 : i64, scratch_operands = 1 : i64, tpu.core_type = #tpu.core_type<tc>, window_params = [{transform_indices = @transform_0, window_bounds = array<i64: 1, 32, 48>}, {pipeline_mode = #tpu.pipeline_mode<synchronous>, transform_indices = @transform_1, window_bounds = array<i64: 48, 1024>}, {pipeline_mode = #tpu.pipeline_mode<synchronous>, transform_indices = @transform_2, window_bounds = array<i64: 1, 1024>}, {pipeline_mode = #tpu.pipeline_mode<synchronous>, transform_indices = @transform_3, window_bounds = array<i64: 1, 1024>}, {pipeline_mode = #tpu.pipeline_mode<synchronous>, transform_indices = @transform_4, window_bounds = array<i64: 1, 1024>}, {pipeline_mode = #tpu.pipeline_mode<synchronous>, transform_indices = @transform_5, window_bounds = array<i64: 1024, 128>}, {pipeline_mode = #tpu.pipeline_mode<synchronous>, transform_indices = @transform_6, window_bounds = array<i64: 1, 128>}, {transform_indices = @transform_7, window_bounds = array<i64: 1, 1, 128>}]} {
    %c0_i32 = arith.constant 0 : i32
    %0 = arith.cmpi eq, %arg1, %c0_i32 : i32
    %1 = arith.extui %0 : i1 to i32
    %c0_i32_0 = arith.constant 0 : i32
    %2 = arith.cmpi ne, %1, %c0_i32_0 : i32
    scf.if %2 {
      %cst_22 = arith.constant 0.000000e+00 : f32
      %43 = vector.broadcast %cst_22 : f32 to vector<1x1024xf32>
      %c0_23 = arith.constant 0 : index
      %c0_24 = arith.constant 0 : index
      %44 = vector.load %arg10[%c0_23, %c0_24] : memref<1x1024xf32, #tpu.memory_space<vmem>>, vector<1x1024xf32>
      tpu.vector_store %arg10[%c0_23, %c0_24], %43 {strides = array<i32>} : memref<1x1024xf32, #tpu.memory_space<vmem>>, vector<1x1024xf32>,
    } else {
    }
    %c0 = arith.constant 0 : index
    %c0_1 = arith.constant 0 : index
    %c0_2 = arith.constant 0 : index
    %3 = vector.load %arg2[%c0, %c0_1, %c0_2] : memref<1x32x48xbf16, #tpu.memory_space<vmem>>, vector<1x32x48xbf16>
    %c0_3 = arith.constant 0 : index
    %c0_4 = arith.constant 0 : index
    %4 = vector.load %arg3[%c0_3, %c0_4] : memref<48x1024xbf16, #tpu.memory_space<vmem>>, vector<48x1024xbf16>
    "tpu.trace_start"() <{level = 10 : i32, message = "btp,pf->btf"}> : () -> ()
    %cst = arith.constant dense<0.000000e+00> : vector<1x32x1024xf32>
    %5 = tpu.matmul %3, %4, %cst {dimension_numbers = #tpu.dot_dimension_numbers<[2], [0], [0, 1], [1], [0, 0, 0, 1, 1, 1], [], []>} : vector<1x32x48xbf16>, vector<48x1024xbf16>, vector<1x32x1024xf32> -> vector<1x32x1024xf32>
    "tpu.trace_stop"() : () -> ()
    %c0_5 = arith.constant 0 : index
    %c0_6 = arith.constant 0 : index
    %6 = vector.load %arg4[%c0_5, %c0_6] : memref<1x1024xf32, #tpu.memory_space<vmem>>, vector<1x1024xf32>
    %7 = vector.shape_cast %6 : vector<1x1024xf32> to vector<1x1x1024xf32>
    %8 = vector.broadcast %7 : vector<1x1x1024xf32> to vector<1x32x1024xf32>
    %9 = arith.addf %5, %8 : vector<1x32x1024xf32>
    %cst_7 = arith.constant dense<0.000000e+00> : vector<1x32xf32>
    %10 = vector.multi_reduction <add>, %9, %cst_7 [2] : vector<1x32x1024xf32> to vector<1x32xf32>
    %11 = vector.shape_cast %10 : vector<1x32xf32> to vector<1x32x1xf32>
    %cst_8 = arith.constant 1.024000e+03 : f32
    %12 = vector.broadcast %cst_8 : f32 to vector<1x32x1xf32>
    %13 = arith.divf %11, %12 : vector<1x32x1xf32>
    %14 = vector.broadcast %13 : vector<1x32x1xf32> to vector<1x32x1024xf32>
    %15 = arith.subf %9, %14 : vector<1x32x1024xf32>
    %16 = arith.mulf %15, %15 : vector<1x32x1024xf32>
    %cst_9 = arith.constant dense<0.000000e+00> : vector<1x32xf32>
    %17 = vector.multi_reduction <add>, %16, %cst_9 [2] : vector<1x32x1024xf32> to vector<1x32xf32>
    %18 = vector.shape_cast %17 : vector<1x32xf32> to vector<1x32x1xf32>
    %cst_10 = arith.constant 1.024000e+03 : f32
    %19 = vector.broadcast %cst_10 : f32 to vector<1x32x1xf32>
    %20 = arith.divf %18, %19 : vector<1x32x1xf32>
    %21 = vector.broadcast %13 : vector<1x32x1xf32> to vector<1x32x1024xf32>
    %22 = arith.subf %9, %21 : vector<1x32x1024xf32>
    %cst_11 = arith.constant 9.99999974E-6 : f32
    %23 = vector.broadcast %cst_11 : f32 to vector<1x32x1xf32>
    %24 = arith.addf %20, %23 : vector<1x32x1xf32>
    %25 = math.rsqrt %24 : vector<1x32x1xf32>
    %26 = vector.broadcast %25 : vector<1x32x1xf32> to vector<1x32x1024xf32>
    %27 = arith.mulf %22, %26 : vector<1x32x1024xf32>
    %c0_12 = arith.constant 0 : index
    %c0_13 = arith.constant 0 : index
    %28 = vector.load %arg5[%c0_12, %c0_13] : memref<1x1024xf32, #tpu.memory_space<vmem>>, vector<1x1024xf32>
    %29 = vector.shape_cast %28 : vector<1x1024xf32> to vector<1x1x1024xf32>
    %30 = vector.broadcast %29 : vector<1x1x1024xf32> to vector<1x32x1024xf32>
    %31 = arith.mulf %27, %30 : vector<1x32x1024xf32>
    %c0_14 = arith.constant 0 : index
    %c0_15 = arith.constant 0 : index
    %32 = vector.load %arg6[%c0_14, %c0_15] : memref<1x1024xf32, #tpu.memory_space<vmem>>, vector<1x1024xf32>
    %33 = vector.shape_cast %32 : vector<1x1024xf32> to vector<1x1x1024xf32>
    %34 = vector.broadcast %33 : vector<1x1x1024xf32> to vector<1x32x1024xf32>
    %35 = arith.addf %31, %34 : vector<1x32x1024xf32>
    %c0_16 = arith.constant 0 : index
    %c0_17 = arith.constant 0 : index
    %36 = vector.load %arg10[%c0_16, %c0_17] : memref<1x1024xf32, #tpu.memory_space<vmem>>, vector<1x1024xf32>
    %cst_18 = arith.constant dense<0.000000e+00> : vector<1x1024xf32>
    %37 = vector.multi_reduction <add>, %35, %cst_18 [1] : vector<1x32x1024xf32> to vector<1x1024xf32>
    %38 = arith.addf %36, %37 : vector<1x1024xf32>
    %c0_19 = arith.constant 0 : index
    %c0_20 = arith.constant 0 : index
    %39 = vector.load %arg10[%c0_19, %c0_20] : memref<1x1024xf32, #tpu.memory_space<vmem>>, vector<1x1024xf32>
    tpu.vector_store %arg10[%c0_19, %c0_20], %38 {strides = array<i32>} : memref<1x1024xf32, #tpu.memory_space<vmem>>, vector<1x1024xf32>,
    %c1_i32 = arith.constant 1 : i32
    %40 = arith.cmpi eq, %arg1, %c1_i32 : i32
    %41 = arith.extui %40 : i1 to i32
    %c0_i32_21 = arith.constant 0 : i32
    %42 = arith.cmpi ne, %41, %c0_i32_21 : i32
    scf.if %42 {
      %c0_22 = arith.constant 0 : index
      %c0_23 = arith.constant 0 : index
      %43 = vector.load %arg10[%c0_22, %c0_23] : memref<1x1024xf32, #tpu.memory_space<vmem>>, vector<1x1024xf32>
      %cst_24 = arith.constant 1.562500e-02 : f32
      %44 = vector.broadcast %cst_24 : f32 to vector<1x1024xf32>
      %45 = arith.mulf %43, %44 : vector<1x1024xf32>
      %46 = arith.truncf %45 : vector<1x1024xf32> to vector<1x1024xbf16>
      %c0_25 = arith.constant 0 : index
      %c0_26 = arith.constant 0 : index
      %47 = vector.load %arg7[%c0_25, %c0_26] : memref<1024x128xbf16, #tpu.memory_space<vmem>>, vector<1024x128xbf16>
      %cst_27 = arith.constant dense<0.000000e+00> : vector<1x128xf32>
      %48 = tpu.matmul %46, %47, %cst_27 {dimension_numbers = #tpu.dot_dimension_numbers<[1], [0], [0], [1], [0, 0, 1, 1], [], []>} : vector<1x1024xbf16>, vector<1024x128xbf16>, vector<1x128xf32> -> vector<1x128xf32>
      %c0_28 = arith.constant 0 : index
      %c0_29 = arith.constant 0 : index
      %49 = vector.load %arg8[%c0_28, %c0_29] : memref<1x128xf32, #tpu.memory_space<vmem>>, vector<1x128xf32>
      %50 = arith.addf %48, %49 : vector<1x128xf32>
      %51 = vector.shape_cast %50 : vector<1x128xf32> to vector<1x1x128xf32>
      %c0_30 = arith.constant 0 : index
      %c0_31 = arith.constant 0 : index
      %c0_32 = arith.constant 0 : index
      %52 = vector.load %arg9[%c0_30, %c0_31, %c0_32] : memref<1x1x128xf32, #tpu.memory_space<vmem>>, vector<1x1x128xf32>
      tpu.vector_store %arg9[%c0_30, %c0_31, %c0_32], %51 {strides = array<i32>} : memref<1x1x128xf32, #tpu.memory_space<vmem>>, vector<1x1x128xf32>,
    } else {
    }
    return
  }
  func.func @transform_0(%arg0: i32, %arg1: i32) -> (i32, i32, i32) {
    %c0_i32 = arith.constant 0 : i32
    %c0_i32_0 = arith.constant 0 : i32
    return %arg0, %arg1, %c0_i32 : i32, i32, i32
  }
  func.func @transform_1(%arg0: i32, %arg1: i32) -> (i32, i32) {
    %c0_i32 = arith.constant 0 : i32
    %c0_i32_0 = arith.constant 0 : i32
    %c0_i32_1 = arith.constant 0 : i32
    return %c0_i32, %c0_i32_0 : i32, i32
  }
  func.func @transform_2(%arg0: i32, %arg1: i32) -> (i32, i32) {
    %c0_i32 = arith.constant 0 : i32
    %c0_i32_0 = arith.constant 0 : i32
    %c0_i32_1 = arith.constant 0 : i32
    return %c0_i32, %c0_i32_0 : i32, i32
  }
  func.func @transform_3(%arg0: i32, %arg1: i32) -> (i32, i32) {
    %c0_i32 = arith.constant 0 : i32
    %c0_i32_0 = arith.constant 0 : i32
    %c0_i32_1 = arith.constant 0 : i32
    return %c0_i32, %c0_i32_0 : i32, i32
  }
  func.func @transform_4(%arg0: i32, %arg1: i32) -> (i32, i32) {
    %c0_i32 = arith.constant 0 : i32
    %c0_i32_0 = arith.constant 0 : i32
    %c0_i32_1 = arith.constant 0 : i32
    return %c0_i32, %c0_i32_0 : i32, i32
  }
  func.func @transform_5(%arg0: i32, %arg1: i32) -> (i32, i32) {
    %c0_i32 = arith.constant 0 : i32
    %c0_i32_0 = arith.constant 0 : i32
    %c0_i32_1 = arith.constant 0 : i32
    return %c0_i32, %c0_i32_0 : i32, i32
  }
  func.func @transform_6(%arg0: i32, %arg1: i32) -> (i32, i32) {
    %c0_i32 = arith.constant 0 : i32
    %c0_i32_0 = arith.constant 0 : i32
    %c0_i32_1 = arith.constant 0 : i32
    return %c0_i32, %c0_i32_0 : i32, i32
  }
  func.func @transform_7(%arg0: i32, %arg1: i32) -> (i32, i32, i32) {
    %c0_i32 = arith.constant 0 : i32
    %c0_i32_0 = arith.constant 0 : i32
    %c0_i32_1 = arith.constant 0 : i32
    return %arg0, %c0_i32, %c0_i32_0 : i32, i32, i32
  }
}

</mosaic_0001>

<bundles_post_ra>
// kernel: swin_deepfake_forward.1
= control target key start
LH: loop header
LB: loop body
LE: loop exit
PB: predicated region body
PF: predicated region fallthrough
CT: control target
= control target key end

     0   :  { %12 = vsyncpa [#allocation4], 0  ;;  %s3387_s0 = inlined_call_operand.vmem [shape: bf16[2,64,48], index: 0, kind: input, shape index: {}]   ;;  %s3388_s1 = inlined_call_operand.vmem [shape: bf16[48,1024], index: 1, kind: input, shape index: {}]   ;;  %s3389_s2 = inlined_call_operand.vmem [shape: f32[1,1024], index: 2, kind: input, shape index: {}]   ;;  %s3390_s3 = inlined_call_operand.vmem [shape: f32[1,1024], index: 3, kind: input, shape index: {}]   ;;  %s3391_s4 = inlined_call_operand.vmem [shape: f32[1,1024], index: 4, kind: input, shape index: {}]   ;;  %s3392_s5 = inlined_call_operand.vmem [shape: bf16[1024,128], index: 5, kind: input, shape index: {}]   ;;  %s3393_s6 = inlined_call_operand.vmem [shape: f32[1,128], index: 6, kind: input, shape index: {}]   ;;  %s3394_s7 = inlined_call_operand.hbm [shape: f32[2,1,128], index: 7, kind: output, shape index: {}]  }
   0x1   :  { %14 = vsyncpa [#allocation4 + $0x1], 0  ;;  %s2494_s24 = smov 0   ;;  %s2496_s25 = smov 0  }
   0x2   :  { %s2498_s26 = smov 0   ;;  %s2500_s27 = smov 0  }
   0x3   :  { %s2502_s28 = smov 0   ;;  %s2504_s29 = smov 0  }
   0x4   :  { %s2506_s30 = smov 0   ;;  %s2508_s8 = smov 0  }
   0x5 LB: > { %s2009_s9 = sadd.s32 4294967295, %s2448_s8   ;;  %s2010_s10 = sadd.s32 4294967294, %s2448_s8   ;;  %s2448_s8 = sphi %s2508_s8, %s20_s8   ;;  %s2444_s30 = sphi %s2506_s30, %s3446_s30   ;;  %s2440_s29 = sphi %s2504_s29, %s3445_s29   ;;  %s2436_s28 = sphi %s2502_s28, %s3444_s28   ;;  %s2432_s27 = sphi %s2500_s27, %s3443_s27   ;;  %s2428_s26 = sphi %s2498_s26, %s3442_s26   ;;  %s2424_s25 = sphi %s2496_s25, %s3441_s25   ;;  %s2420_s24 = sphi %s2494_s24, %s3440_s24  }
   0x6   : > { %s29_s11 = sadd.s32 1, %s2440_s29  ;;  %s32_s12 = sadd.s32 1, %s2444_s30 }
   0x7   : > { %p30_p0 = scmp.ge.s32.totalorder %s29_s11, 2  ;;  %p203_p1 = scmp.ne.s32.totalorder %s2428_s26, %s2424_s25 }
   0x8   : > { %p204_p2 = scmp.eq.s32.totalorder %s2009_s9, 3  ;;  %p209_p4 = scmp.ne.s32.totalorder %s2424_s25, %s2420_s24 }
   0x9   : > { %s3448_s11 = smov (%p30_p0, %s29_s11), 0  ;;  %s3450_s12 = smov (!%p30_p0, %s32_s12), %s2444_s30 }
   0xa   : > { %3409 = sst [smem:[#allocation6_spill]] %s3448_s11  ;;  %p2543_p3 = por %p204_p2, %p203_p1 }
   0xb   : > { %p34_p5 = scmp.ge.s32.totalorder %s3450_s12, 2  ;;  %p210_p6 = scmp.eq.s32.totalorder %s2010_s10, 3 }
   0xc   : > { %p2013_p7 = scmp.ge.s32.totalorder %s2448_s8, 1  ;;  %p259_p8 = scmp.lt.s32.totalorder %s2448_s8, 5 }
   0xd   : > { %s3452_s12 = smov (%p34_p5, %s3450_s12), 0  ;;  %p2553_p9 = por %p210_p6, %p209_p4 }
   0xe   : > { %3411 = sst [smem:[#allocation7_spill]] %s3452_s12  ;;  %p260_p10 = pnand %p2013_p7, %p259_p8 }
   0xf   : > { %s190_s15 = ssub.s32 %s2444_s30, %s3452_s12  ;;  %s193_s16 = sadd.s32 1, %s2428_s26 }
  0x10   : > { %p191_p11 = scmp.eq.s32.totalorder %s190_s15, 0  ;;  %263 = sbr.rel (%p260_p10) target bundleno = 932 (0x3a4), region = 48 }
  0x12   : > { %s2561_s17 = scalar_select %p191_p11, %s2428_s26, %s193_s16  }
  0x15   : > { %s3396_s18 = sand.u32 1, %s2424_s25   ;;  %s2014_s19 = sshll.u32 %s2432_s27, 2 }
  0x16   : > { %p295_p12 = scmp.lt.s32.totalorder %s2436_s28, 1  ;;  %p297_p13 = scmp.lt.s32.totalorder %s2014_s19, 7 }
  0x17   : > { %s2574_s16 = scalar_lea.vmem [#allocation3], %s3396_s18  ;;  %p2017_p0 = scmp.ne.s32.totalorder %s2432_s27, 0 }
  0x18   : > { %s296_s20 = scalar_select %p295_p12, %s2436_s28, 1 }
  0x19   : > { %s3454_s19 = smov (!%p297_p13, %s2014_s19), 7  ;;  %308 = sbr.rel (%p2017_p0) target bundleno = 32 (0x20), region = 52 }
  0x1a   : > { %s2015_s21 = sshll.u32 %s296_s20, 3 }
  0x1b   : > { %s300_s22 = sadd.s32 %s2015_s21, %s3454_s19 }
  0x1c   : > { %s2016_s23 = sshll.u32 %s300_s22, 2 }
  0x1d   : > { %s2570_s15 = scalar_lea.vmem %s3387_s0, %s2016_s23 }
  0x1e   : > { %v2450_v0 = vmov 0.0  }
  0x1f   : > { %309 = vst [vmem:[#allocation2] sm:$0xff] %v2450_v0 }
  0x20 PF: > { %v330_v1 = vld [vmem:[%s3388_s1 + $0x80] sm:$0xff]  ;;  %v331_v3 = vld [vmem:[%s3388_s1 + $0x88] sm:$0xff]  ;;  %v2451_v9 = vmov 0   ;;  %v332_v24 = vld [vmem:[%s3388_s1 + $0x90] sm:$0xff]  ;;  %vm510_vm0 = vcmask 392192   ;;  %v340_v52 = vlaneseq  ;;  %p2052_p1 = scmp.ne.s32.totalorder %s2432_s27, 1 }
  0x21   : > { %v334_v2 = vld [vmem:[%s3388_s1 + $0xa0] sm:$0xff]  ;;  %v335_v5 = vld [vmem:[%s3388_s1 + $0xa8] sm:$0xff]  ;;  %549 = vmatprep.mubr.bf16.mxu0 %v2451_v9  ;;  %602 = vmatprep.mubr.bf16.mxu1 %v2451_v9  ;;  %v336_v25 = vld [vmem:[%s3388_s1 + $0xb0] sm:$0xff] }
  0x22   : > { %v2037_v4 = vcombine.high %v330_v1, %v334_v2  ;;  %v2036_v6 = vcombine.low %v330_v1, %v334_v2  ;;  %v322_v7 = vld [vmem:[%s3388_s1 + $0x40] sm:$0xff]  ;;  %v2039_v10 = vcombine.high %v331_v3, %v335_v5  ;;  %v2038_v11 = vcombine.low %v331_v3, %v335_v5  ;;  %v323_v13 = vld [vmem:[%s3388_s1 + $0x48] sm:$0xff]  ;;  %v333_v26 = vld [vmem:[%s3388_s1 + $0x98] sm:$0xff] }
  0x23   : > { %v326_v8 = vld [vmem:[%s3388_s1 + $0x60] sm:$0xff]  ;;  %v327_v14 = vld [vmem:[%s3388_s1 + $0x68] sm:$0xff]  ;;  %v337_v27 = vld [vmem:[%s3388_s1 + $0xb8] sm:$0xff]  ;;  %v2041_v30 = vcombine.high %v332_v24, %v336_v25  ;;  %v2040_v35 = vcombine.low %v332_v24, %v336_v25  ;;  %v2667_v53 = vshrl.u32 %v340_v52, 7 }
  0x24   : > { %v2029_v12 = vcombine.high %v322_v7, %v326_v8  ;;  %v314_v15 = vld [vmem:[%s3388_s1] sm:$0xff]  ;;  %527 = vmatprep.subr.bf16.mxu0 %v2037_v4  ;;  %v2031_v16 = vcombine.high %v323_v13, %v327_v14  ;;  %v315_v18 = vld [vmem:[%s3388_s1 + $0x8] sm:$0xff]  ;;  %580 = vmatprep.subr.bf16.mxu1 %v2039_v10  ;;  %v2028_v20 = vcombine.low %v322_v7, %v326_v8  ;;  %v324_v32 = vld [vmem:[%s3388_s1 + $0x50] sm:$0xff] }
  0x25   : > { %v318_v17 = vld [vmem:[%s3388_s1 + $0x20] sm:$0xff]  ;;  %v319_v19 = vld [vmem:[%s3388_s1 + $0x28] sm:$0xff]  ;;  %528 = vmatpush1.bf16.msra.mxu0 %v2036_v6  ;;  %581 = vmatpush1.bf16.msra.mxu1 %v2038_v11  ;;  %v2030_v21 = vcombine.low %v323_v13, %v327_v14  ;;  %v2043_v31 = vcombine.high %v333_v26, %v337_v27  ;;  %v328_v33 = vld [vmem:[%s3388_s1 + $0x70] sm:$0xff]  ;;  %v2042_v38 = vcombine.low %v333_v26, %v337_v27  ;;  %v2670_v54 = vsub.s32 1, %v2667_v53 }
  0x26   : > { %529 = vmatprep.subr.bf16.mxu0 %v2029_v12  ;;  %v2021_v22 = vcombine.high %v314_v15, %v318_v17  ;;  %582 = vmatprep.subr.bf16.mxu1 %v2031_v16  ;;  %v2023_v23 = vcombine.high %v315_v18, %v319_v19  ;;  %v2020_v28 = vcombine.low %v314_v15, %v318_v17  ;;  %v2282_v34 = vld [vmem:[%s2570_s15] sm:$0xff]   ;;  %v325_v36 = vld [vmem:[%s3388_s1 + $0x58] sm:$0xff]  ;;  %v316_v40 = vld [vmem:[%s3388_s1 + $0x10] sm:$0xff]  ;;  %v2673_v55 = vsub.s32 0, %v2667_v53 }
  0x27   : > { %v2022_v29 = vcombine.low %v315_v18, %v319_v19  ;;  %v329_v37 = vld [vmem:[%s3388_s1 + $0x78] sm:$0xff]  ;;  %v2033_v39 = vcombine.high %v324_v32, %v328_v33  ;;  %v320_v41 = vld [vmem:[%s3388_s1 + $0x30] sm:$0xff]  ;;  %v2032_v45 = vcombine.low %v324_v32, %v328_v33  ;;  %v2283_v49 = vld [vmem:[%s2570_s15 + $0x8] sm:$0xff]   ;;  %3413 = vst [vmem:[#allocation8_spill] sm:$0xff] %v2670_v54  ;;  %v2679_v58 = vsub.s32 2, %v2667_v53 }
  0x28   : > { %v2035_v42 = vcombine.high %v325_v36, %v329_v37  ;;  %v317_v43 = vld [vmem:[%s3388_s1 + $0x18] sm:$0xff]  ;;  %v2034_v46 = vcombine.low %v325_v36, %v329_v37  ;;  %v2025_v47 = vcombine.high %v316_v40, %v320_v41  ;;  %v2024_v50 = vcombine.low %v316_v40, %v320_v41  ;;  %3414 = vst [vmem:[#allocation9_spill] sm:$0xff] %v2673_v55  ;;  %v338_v56 = vld [vmem:[%s3389_s2] sm:$0xff] }
  0x29   : > { %530 = vmatpush1.bf16.msra.mxu0 %v2028_v20  ;;  %583 = vmatpush1.bf16.msra.mxu1 %v2030_v21  ;;  %v321_v44 = vld [vmem:[%s3388_s1 + $0x38] sm:$0xff]  ;;  %3415 = vst [vmem:[#allocation10_spill] sm:$0xff] %v2679_v58  ;;  %v347_v60 = vrot.slane %v338_v56, %v2670_v54  ;;  %v343_v62 = vrot.slane %v338_v56, %v2673_v55  ;;  %v2689_v6 = vsub.s32 3, %v2667_v53  ;;  %v2698_v13 = vsub.s32 4, %v2667_v53 }
  0x2a   : > { %531 = vmatprep.subr.bf16.mxu0 %v2021_v22  ;;  %584 = vmatprep.subr.bf16.mxu1 %v2023_v23  ;;  %v2027_v48 = vcombine.high %v317_v43, %v321_v44  ;;  %v2026_v51 = vcombine.low %v317_v43, %v321_v44  ;;  %v351_v1 = vrot.slane %v338_v56, %v2679_v58  ;;  %v2704_v18 = vsub.s32 6, %v2667_v53 }
  0x2b   : > { %3416 = vst [vmem:[#allocation11_spill] sm:$0xff] %v2689_v6  ;;  %3417 = vst [vmem:[#allocation12_spill] sm:$0xff] %v2698_v13  ;;  %v355_v15 = vrot.slane %v338_v56, %v2689_v6  ;;  %v2707_v19 = vsub.s32 5, %v2667_v53  ;;  %v359_v25 = vrot.slane %v338_v56, %v2698_v13 }
  0x2c   : > { %3418 = vst [vmem:[#allocation13_spill] sm:$0xff] %v2704_v18  ;;  %v2725_v32 = vrot.slane %v338_v56, %v2704_v18 }
  0x2d   : > { %532 = vmatpush1.bf16.msra.mxu0 %v2020_v28  ;;  %585 = vmatpush1.bf16.msra.mxu1 %v2022_v29  ;;  %3419 = vst [vmem:[#allocation14_spill] sm:$0xff] %v2707_v19  ;;  %v2718_v28 = vsub.s32 7, %v2667_v53  ;;  %v363_v33 = vrot.slane %v338_v56, %v2707_v19 }
  0x2e   : > { %633 = vmatprep.subr.bf16.mxu0 %v2041_v30  ;;  %686 = vmatprep.subr.bf16.mxu1 %v2043_v31 }
  0x2f   : > { %3420 = vst [vmem:[#allocation15_spill] sm:$0xff] %v2718_v28  ;;  %v371_v44 = vrot.slane %v338_v56, %v2718_v28 }
  0x30   : > { %2044 = vmatmul.mubr.msk.bf16.vlgmr.msra.gmra.mxu0 %vm510_vm0, %v2282_v34  ;;  %2046 = vmatmul.mubr.msk.bf16.vlgmr.msra.gmra.mxu1 %vm510_vm0, %v2282_v34 }
  0x31   : > { %634 = vmatpush1.bf16.msra.mxu0 %v2040_v35  ;;  %687 = vmatpush1.bf16.msra.mxu1 %v2042_v38 }
  0x32   : > { %635 = vmatprep.subr.bf16.mxu0 %v2033_v39  ;;  %559 = vmatprep.mubr.bf16.mxu0 %v2451_v9 }
  0x33   : > { %612 = vmatprep.mubr.bf16.mxu1 %v2451_v9  ;;  %688 = vmatprep.subr.bf16.mxu1 %v2035_v42 }
  0x35   : > { %636 = vmatpush1.bf16.msra.mxu0 %v2032_v45  ;;  %689 = vmatpush1.bf16.msra.mxu1 %v2034_v46 }
  0x36   : > { %637 = vmatprep.subr.bf16.mxu0 %v2025_v47  ;;  %690 = vmatprep.subr.bf16.mxu1 %v2027_v48 }
  0x38   : > { %2045 = vmatmul.mubr.msk.bf16.gmra.mxu0 %vm510_vm0, %v2283_v49  ;;  %2047 = vmatmul.mubr.msk.bf16.gmra.mxu1 %vm510_vm0, %v2283_v49 }
  0x39   : > { %638 = vmatpush1.bf16.msra.mxu0 %v2024_v50  ;;  %691 = vmatpush1.bf16.msra.mxu1 %v2026_v51 }
  0x3a   : > { %655 = vmatprep.mubr.bf16.mxu0 %v2451_v9  ;;  %708 = vmatprep.mubr.bf16.mxu1 %v2451_v9 }
  0x40   : > { %2048 = vmatmul.mubr.msk.bf16.vlgmr.msra.gmra.mxu0 %vm510_vm0, %v2282_v34  ;;  %2050 = vmatmul.mubr.msk.bf16.vlgmr.msra.gmra.mxu1 %vm510_vm0, %v2282_v34 }
  0x41   : > { %665 = vmatprep.mubr.bf16.mxu0 %v2451_v9  ;;  %718 = vmatprep.mubr.bf16.mxu1 %v2451_v9 }
  0x48   : > { %2049 = vmatmul.mubr.msk.bf16.gmra.mxu0 %vm510_vm0, %v2283_v49  ;;  %2051 = vmatmul.mubr.msk.bf16.gmra.mxu1 %vm510_vm0, %v2283_v49 }
  0xf0   : > { %v551_v57 = vpop.f32.mrf.mxu0  ;;  %v604_v59 = vpop.f32.mrf.mxu1 }
  0xf1   : > { %v2686_v5 = vadd.f32 %v551_v57, %v343_v62  ;;  %v2691_v9 = vadd.f32 %v604_v59, %v351_v1 }
  0xf2   : > { %v553_v61 = vpop.f32.mrf.mxu0  ;;  %v606_v63 = vpop.f32.mrf.mxu1 }
  0xf3   : > { %v2684_v2 = vadd.f32 %v553_v61, %v347_v60  ;;  %v2720_v29 = vadd.f32 %v606_v63, %v355_v15 }
  0xf4   : > { %v555_v0 = vpop.f32.mrf.mxu0  ;;  %v608_v3 = vpop.f32.mrf.mxu1 }
  0xf5   : > { %v729_v10 = vadd.f32 %v2684_v2, %v2686_v5  ;;  %v2701_v16 = vadd.f32 %v555_v0, %v343_v62  ;;  %v2722_v30 = vadd.f32 %v608_v3, %v351_v1 }
  0xf6   : > { %v557_v4 = vpop.f32.mrf.mxu0  ;;  %v610_v7 = vpop.f32.mrf.mxu1 }
  0xf7   : > { %v2695_v11 = vadd.f32 %v557_v4, %v347_v60  ;;  %v730_v22 = vadd.f32 %v729_v10, %v2691_v9  ;;  %v2741_v45 = vadd.f32 %v610_v7, %v355_v15 }
  0xf8   : > { %v561_v8 = vpop.f32.mrf.mxu0  ;;  %v614_v12 = vpop.f32.mrf.mxu1 }
  0xf9   : > { %v738_v23 = vadd.f32 %v2695_v11, %v2701_v16  ;;  %v2715_v26 = vadd.f32 %v561_v8, %v343_v62  ;;  %v2728_v34 = vadd.f32 %v614_v12, %v351_v1  ;;  %v731_v38 = vadd.f32 %v730_v22, %v2720_v29 }
  0xfa   : > { %v563_v14 = vpop.f32.mrf.mxu0  ;;  %v616_v17 = vpop.f32.mrf.mxu1 }
  0xfb   : > { %v2709_v20 = vadd.f32 %v563_v14, %v347_v60  ;;  %v739_v39 = vadd.f32 %v738_v23, %v2722_v30  ;;  %v2756_v61 = vadd.f32 %v616_v17, %v355_v15 }
  0xfc   : > { %v565_v21 = vpop.f32.mrf.mxu0  ;;  %v618_v24 = vpop.f32.mrf.mxu1 }
  0xfd   : > { %v747_v35 = vadd.f32 %v2709_v20, %v2715_v26  ;;  %v2738_v42 = vadd.f32 %v565_v21, %v343_v62  ;;  %v740_v57 = vadd.f32 %v739_v39, %v2741_v45  ;;  %v2758_v62 = vadd.f32 %v618_v24, %v351_v1 }
  0xfe   : > { %v567_v27 = vpop.f32.mrf.mxu0  ;;  %v620_v31 = vpop.f32.mrf.mxu1 }
  0xff   : > { %v2732_v36 = vadd.f32 %v567_v27, %v347_v60  ;;  %v748_v50 = vadd.f32 %v747_v35, %v2728_v34  ;;  %v2775_v24 = vadd.f32 %v620_v31, %v355_v15 }
 0x100   : > { %v657_v37 = vpop.f32.mrf.mxu0  ;;  %v710_v41 = vpop.f32.mrf.mxu1 }
 0x101   : > { %v2736_v40 = vadd.f32 %v657_v37, %v359_v25  ;;  %v2745_v47 = vadd.f32 %v710_v41, %v2725_v32  ;;  %v756_v51 = vadd.f32 %v2732_v36, %v2738_v42  ;;  %v749_v10 = vadd.f32 %v748_v50, %v2756_v61 }
 0x102   : > { %v659_v43 = vpop.f32.mrf.mxu0  ;;  %v712_v49 = vpop.f32.mrf.mxu1 }
 0x103   : > { %v732_v46 = vadd.f32 %v731_v38, %v2736_v40  ;;  %v2747_v48 = vadd.f32 %v659_v43, %v363_v33  ;;  %v2760_v0 = vadd.f32 %v712_v49, %v371_v44  ;;  %v757_v12 = vadd.f32 %v756_v51, %v2758_v62 }
 0x104   : > { %v661_v52 = vpop.f32.mrf.mxu0  ;;  %v714_v60 = vpop.f32.mrf.mxu1 }
 0x105   : > { %v733_v56 = vadd.f32 %v732_v46, %v2747_v48  ;;  %v2754_v59 = vadd.f32 %v661_v52, %v359_v25  ;;  %v2769_v17 = vadd.f32 %v714_v60, %v2725_v32  ;;  %v758_v49 = vadd.f32 %v757_v12, %v2775_v24 }
 0x106   : > { %v663_v63 = vpop.f32.mrf.mxu0  ;;  %v716_v7 = vpop.f32.mrf.mxu1 }
 0x107   : > { %v741_v3 = vadd.f32 %v740_v57, %v2754_v59  ;;  %v2763_v4 = vadd.f32 %v663_v63, %v363_v33  ;;  %v734_v8 = vadd.f32 %v733_v56, %v2745_v47  ;;  %v2777_v27 = vadd.f32 %v716_v7, %v371_v44 }
 0x108   : > { %v667_v14 = vpop.f32.mrf.mxu0  ;;  %v720_v22 = vpop.f32.mrf.mxu1 }
 0x109   : > { %v742_v1 = vadd.f32 %v741_v3, %v2763_v4  ;;  %v2772_v21 = vadd.f32 %v667_v14, %v359_v25  ;;  %v735_v23 = vadd.f32 %v734_v8, %v2760_v0  ;;  %v2781_v38 = vadd.f32 %v720_v22, %v2725_v32 }
 0x10a   : > { %v669_v35 = vpop.f32.mrf.mxu0  ;;  %v722_v41 = vpop.f32.mrf.mxu1 }
 0x10b   : > { %v750_v37 = vadd.f32 %v749_v10, %v2772_v21  ;;  %v2783_v39 = vadd.f32 %v669_v35, %v363_v33  ;;  %736 = vadd.xlane.f32.xlu0 %v735_v23  ;;  %v743_v43 = vadd.f32 %v742_v1, %v2769_v17  ;;  %v2791_v57 = vadd.f32 %v722_v41, %v371_v44 }
 0x10c   : > { %v671_v46 = vpop.f32.mrf.mxu0  ;;  %v724_v50 = vpop.f32.mrf.mxu1 }
 0x10d   : > { %v751_v15 = vadd.f32 %v750_v37, %v2783_v39  ;;  %v2788_v31 = vadd.f32 %v671_v46, %v359_v25  ;;  %v744_v51 = vadd.f32 %v743_v43, %v2777_v27  ;;  %v2798_v7 = vadd.f32 %v724_v50, %v2725_v32 }
 0x10e   : > { %v673_v52 = vpop.f32.mrf.mxu0  ;;  %v726_v3 = vpop.f32.mrf.mxu1 }
 0x10f   : > { %v759_v56 = vadd.f32 %v758_v49, %v2788_v31  ;;  %v2794_v60 = vadd.f32 %v673_v52, %v363_v33  ;;  %745 = vadd.xlane.f32.xlu0 %v744_v51  ;;  %v752_v63 = vadd.f32 %v751_v15, %v2781_v38  ;;  %v2802_v10 = vadd.f32 %v726_v3, %v371_v44 }
 0x111   : > { %v760_v25 = vadd.f32 %v759_v56, %v2794_v60  ;;  %v753_v8 = vadd.f32 %v752_v63, %v2791_v57 }
 0x113   : > { %754 = vadd.xlane.f32.xlu1 %v753_v8  ;;  %v761_v12 = vadd.f32 %v760_v25, %v2798_v7 }
 0x115   : > { %v762_v14 = vadd.f32 %v761_v12, %v2802_v10 }
 0x117   : > { %763 = vadd.xlane.f32.xlu1 %v762_v14 }
 0x194   : > { %v737_v33 = vpop.xlane.xlu0 %736 }
 0x195   : > { %v766_v1 = vmul.f32 0.0009765625, %v737_v33 }
 0x197   : > { %v2807_v22 = vsub.f32 %v2686_v5, %v766_v1  ;;  %v2810_v32 = vsub.f32 %v2684_v2, %v766_v1  ;;  %v2813_v23 = vsub.f32 %v2691_v9, %v766_v1  ;;  %v2816_v37 = vsub.f32 %v2720_v29, %v766_v1 }
 0x198   : > { %v746_v35 = vpop.xlane.xlu0 %745  ;;  %v2823_v5 = vsub.f32 %v2736_v40, %v766_v1  ;;  %v2826_v2 = vsub.f32 %v2747_v48, %v766_v1  ;;  %v2840_v40 = vsub.f32 %v2745_v47, %v766_v1  ;;  %v2845_v56 = vsub.f32 %v2760_v0, %v766_v1 }
 0x199   : > { %v767_v44 = vmul.f32 0.0009765625, %v746_v35  ;;  %v802_v41 = vmul.f32 %v2807_v22, %v2807_v22  ;;  %v803_v43 = vmul.f32 %v2810_v32, %v2810_v32  ;;  %v804_v9 = vmul.f32 %v2813_v23, %v2813_v23 }
 0x19a   : > { %v805_v48 = vmul.f32 %v2816_v37, %v2816_v37  ;;  %v806_v47 = vmul.f32 %v2823_v5, %v2823_v5  ;;  %v807_v63 = vmul.f32 %v2826_v2, %v2826_v2  ;;  %v808_v33 = vmul.f32 %v2840_v40, %v2840_v40 }
 0x19b   : > { %v834_v46 = vadd.f32 %v803_v43, %v802_v41  ;;  %v2831_v49 = vsub.f32 %v2701_v16, %v767_v44  ;;  %v2834_v29 = vsub.f32 %v2695_v11, %v767_v44  ;;  %v2837_v50 = vsub.f32 %v2722_v30, %v767_v44 }
 0x19c   : > { %v755_v15 = vpop.xlane.xlu1 %754  ;;  %v2848_v16 = vsub.f32 %v2741_v45, %v767_v44  ;;  %v2859_v25 = vsub.f32 %v2754_v59, %v767_v44  ;;  %v2872_v35 = vsub.f32 %v2763_v4, %v767_v44  ;;  %v809_v43 = vmul.f32 %v2845_v56, %v2845_v56 }
 0x19d   : > { %v768_v51 = vmul.f32 0.0009765625, %v755_v15  ;;  %v835_v52 = vadd.f32 %v834_v46, %v804_v9  ;;  %v810_v11 = vmul.f32 %v2831_v49, %v2831_v49  ;;  %v811_v30 = vmul.f32 %v2834_v29, %v2834_v29 }
 0x19e   : > { %v812_v45 = vmul.f32 %v2837_v50, %v2837_v50  ;;  %v2882_v46 = vsub.f32 %v2769_v17, %v767_v44  ;;  %v815_v17 = vmul.f32 %v2872_v35, %v2872_v35 }
 0x19f   : > { %v836_v3 = vadd.f32 %v835_v52, %v805_v48  ;;  %v843_v8 = vadd.f32 %v811_v30, %v810_v11  ;;  %v2864_v12 = vsub.f32 %v2715_v26, %v768_v51  ;;  %v2867_v14 = vsub.f32 %v2709_v20, %v768_v51 }
 0x1a0   : > { %v764_v0 = vpop.xlane.xlu1 %763  ;;  %v2875_v59 = vsub.f32 %v2728_v34, %v768_v51  ;;  %v813_v26 = vmul.f32 %v2848_v16, %v2848_v16  ;;  %v2889_v34 = vsub.f32 %v2777_v27, %v767_v44  ;;  %v814_v48 = vmul.f32 %v2859_v25, %v2859_v25 }
 0x1a1   : > { %v837_v1 = vadd.f32 %v836_v3, %v806_v47  ;;  %v769_v41 = vmul.f32 0.0009765625, %v764_v0  ;;  %v844_v9 = vadd.f32 %v843_v8, %v812_v45  ;;  %v818_v15 = vmul.f32 %v2864_v12, %v2864_v12 }
 0x1a2   : > { %v819_v4 = vmul.f32 %v2867_v14, %v2867_v14  ;;  %v2894_v11 = vsub.f32 %v2756_v61, %v768_v51  ;;  %v2899_v47 = vsub.f32 %v2772_v21, %v768_v51  ;;  %v816_v45 = vmul.f32 %v2882_v46, %v2882_v46 }
 0x1a3   : > { %v838_v20 = vadd.f32 %v837_v1, %v807_v63  ;;  %v845_v52 = vadd.f32 %v844_v9, %v813_v26  ;;  %v820_v63 = vmul.f32 %v2875_v59, %v2875_v59  ;;  %v2904_v44 = vsub.f32 %v2738_v42, %v769_v41 }
 0x1a4   : > { %v852_v27 = vadd.f32 %v819_v4, %v818_v15  ;;  %v2907_v0 = vsub.f32 %v2732_v36, %v769_v41  ;;  %v2912_v8 = vsub.f32 %v2758_v62, %v769_v41  ;;  %v821_v1 = vmul.f32 %v2894_v11, %v2894_v11 }
 0x1a5   : > { %v839_v30 = vadd.f32 %v838_v20, %v808_v33  ;;  %v846_v3 = vadd.f32 %v845_v52, %v814_v48  ;;  %v2915_v33 = vsub.f32 %v2783_v39, %v768_v51  ;;  %v817_v36 = vmul.f32 %v2889_v34, %v2889_v34 }
 0x1a6   : > { %v853_v26 = vadd.f32 %v852_v27, %v820_v63  ;;  %v2922_v42 = vsub.f32 %v2775_v24, %v769_v41  ;;  %v827_v62 = vmul.f32 %v2907_v0, %v2907_v0  ;;  %v2929_v39 = vsub.f32 %v2781_v38, %v768_v51 }
 0x1a7   : > { %v840_v61 = vadd.f32 %v839_v30, %v809_v43  ;;  %v847_v21 = vadd.f32 %v846_v3, %v815_v17  ;;  %v826_v43 = vmul.f32 %v2904_v44, %v2904_v44  ;;  %v822_v20 = vmul.f32 %v2899_v47, %v2899_v47 }
 0x1a8   : > { %v854_v15 = vadd.f32 %v853_v26, %v821_v1  ;;  %v2934_v4 = vsub.f32 %v2788_v31, %v769_v41  ;;  %v828_v24 = vmul.f32 %v2912_v8, %v2912_v8  ;;  %v2939_v30 = vsub.f32 %v2791_v57, %v768_v51 }
 0x1a9   : > { %841 = vadd.xlane.f32.xlu0 %v840_v61  ;;  %v848_v9 = vadd.f32 %v847_v21, %v816_v45  ;;  %v861_v48 = vadd.f32 %v827_v62, %v826_v43  ;;  %v823_v17 = vmul.f32 %v2915_v33, %v2915_v33  ;;  %v2944_v63 = vsub.f32 %v2794_v60, %v769_v41 }
 0x1aa   : > { %v855_v38 = vadd.f32 %v854_v15, %v822_v20  ;;  %v829_v3 = vmul.f32 %v2922_v42, %v2922_v42  ;;  %v824_v27 = vmul.f32 %v2929_v39, %v2929_v39  ;;  %v2951_v45 = vsub.f32 %v2798_v7, %v769_v41 }
 0x1ab   : > { %v849_v52 = vadd.f32 %v848_v9, %v817_v36  ;;  %v862_v31 = vadd.f32 %v861_v48, %v828_v24  ;;  %v830_v57 = vmul.f32 %v2934_v4, %v2934_v4  ;;  %v825_v60 = vmul.f32 %v2939_v30, %v2939_v30 }
 0x1ac   : > { %v856_v61 = vadd.f32 %v855_v38, %v823_v17  ;;  %v2958_v1 = vsub.f32 %v2802_v10, %v769_v41  ;;  %v831_v26 = vmul.f32 %v2944_v63, %v2944_v63  ;;  %v832_v7 = vmul.f32 %v2951_v45, %v2951_v45 }
 0x1ad   : > { %850 = vadd.xlane.f32.xlu1 %v849_v52  ;;  %v863_v51 = vadd.f32 %v862_v31, %v829_v3 }
 0x1ae   : > { %v857_v21 = vadd.f32 %v856_v61, %v824_v27  ;;  %v833_v9 = vmul.f32 %v2958_v1, %v2958_v1  ;;  %v914_v27 = vld [vmem:[%s3390_s3] sm:$0xff] }
 0x1af   : > { %v864_v36 = vadd.f32 %v863_v51, %v830_v57  ;;  %v988_v61 = vld [vmem:[%s3391_s4] sm:$0xff]  ;;  %v2973_v51 = vrot.slane %v914_v27, %v2673_v55 }
 0x1b0   : > { %v858_v43 = vadd.f32 %v857_v21, %v825_v60  ;;  %v2976_v60 = vrot.slane %v988_v61, %v2673_v55  ;;  %v2979_v21 = vrot.slane %v914_v27, %v2679_v58 }
 0x1b1   : > { %v865_v62 = vadd.f32 %v864_v36, %v831_v26  ;;  %v2982_v26 = vrot.slane %v914_v27, %v2670_v54  ;;  %v2985_v36 = vrot.slane %v914_v27, %v2689_v6 }
 0x1b2   : > { %859 = vadd.xlane.f32.xlu0 %v858_v43  ;;  %v2988_v43 = vrot.slane %v914_v27, %v2698_v13 }
 0x1b3   : > { %v866_v20 = vadd.f32 %v865_v62, %v832_v7  ;;  %v2991_v7 = vrot.slane %v914_v27, %v2707_v19 }
 0x1b5   : > { %v867_v15 = vadd.f32 %v866_v20, %v833_v9  ;;  %v2452_v20 = vmov 1966171168  }
 0x1b7   : > { %868 = vadd.xlane.f32.xlu1 %v867_v15  ;;  %v1148_v15 = vunpack.c.l.s4 %v2452_v20 }
 0x232   : > { %v842_v24 = vpop.xlane.xlu0 %841 }
 0x233   : > { %v870_v48 = vmul.f32 0.0009765625, %v842_v24 }
 0x235   : > { %v874_v10 = vadd.f32 1e-05, %v870_v48 }
 0x236   : > { %v851_v41 = vpop.xlane.xlu1 %850 }
 0x237   : > { %2284 = vrsqrt.f32 %v874_v10  ;;  %v871_v17 = vmul.f32 0.0009765625, %v851_v41 }
 0x239   : > { %v875_v3 = vadd.f32 1e-05, %v871_v17  ;;  %v3003_v17 = vrot.slane %v914_v27, %v2718_v28 }
 0x23b   : > { %v860_v52 = vpop.xlane.xlu0 %859  ;;  %2286 = vrsqrt.f32 %v875_v3 }
 0x23c   : > { %v872_v38 = vmul.f32 0.0009765625, %v860_v52  ;;  %v3000_v52 = vrot.slane %v914_v27, %v2704_v18 }
 0x23e   : > { %v876_v31 = vadd.f32 1e-05, %v872_v38  ;;  %v3008_v38 = vrot.slane %v988_v61, %v2679_v58 }
 0x240   : > { %2288 = vrsqrt.f32 %v876_v31  ;;  %v869_v31 = vpop.xlane.xlu1 %868 }
 0x241   : > { %v873_v55 = vmul.f32 0.0009765625, %v869_v31 }
 0x244   : > { %v2285_v57 = vpop.eup %2284 }
 0x245   : > { %v882_v62 = vmul.f32 %v2285_v57, %v2807_v22  ;;  %v883_v9 = vmul.f32 %v2285_v57, %v2810_v32  ;;  %v884_v24 = vmul.f32 %v2285_v57, %v2813_v23  ;;  %v885_v48 = vmul.f32 %v2285_v57, %v2816_v37 }
 0x246   : > { %v886_v10 = vmul.f32 %v2285_v57, %v2823_v5  ;;  %v887_v41 = vmul.f32 %v2285_v57, %v2826_v2  ;;  %v888_v22 = vmul.f32 %v2285_v57, %v2840_v40  ;;  %v889_v32 = vmul.f32 %v2285_v57, %v2845_v56 }
 0x247   : > { %v3011_v23 = vrot.slane %v988_v61, %v2670_v54  ;;  %v3014_v37 = vrot.slane %v988_v61, %v2689_v6  ;;  %v3017_v5 = vrot.slane %v988_v61, %v2698_v13  ;;  %v3020_v2 = vrot.slane %v988_v61, %v2707_v19 }
 0x248   : > { %v956_v3 = vmul.f32 %v2973_v51, %v882_v62  ;;  %v957_v40 = vmul.f32 %v2982_v26, %v883_v9  ;;  %v1149_v56 = vunpack.c.0.s8 %v1148_v15  ;;  %v958_v27 = vmul.f32 %v2979_v21, %v884_v24  ;;  %v2287_v15 = vpop.eup %2286 }
 0x249   : > { %3421 = vst [vmem:[#allocation16_spill] sm:$0xff] %v3014_v37  ;;  %3422 = vst [vmem:[#allocation17_spill] sm:$0xff] %v3017_v5  ;;  %v959_v57 = vmul.f32 %v2985_v36, %v885_v48  ;;  %v960_v20 = vmul.f32 %v2988_v43, %v886_v10  ;;  %v961_v58 = vmul.f32 %v2991_v7, %v887_v41 }
 0x24a   : > { %3423 = vst [vmem:[#allocation18_spill] sm:$0xff] %v3020_v2  ;;  %v3029_v13 = vrot.slane %v988_v61, %v2704_v18  ;;  %v3032_v19 = vrot.slane %v988_v61, %v2718_v28  ;;  %v962_v62 = vmul.f32 %v3000_v52, %v888_v22  ;;  %v963_v9 = vmul.f32 %v3003_v17, %v889_v32 }
 0x24b   : > { %v1030_v24 = vadd.f32 %v2976_v60, %v956_v3  ;;  %v1031_v48 = vadd.f32 %v3011_v23, %v957_v40  ;;  %v3039_v10 = vsub.s32 %v1149_v56, %v2667_v53  ;;  %v1032_v18 = vadd.f32 %v3008_v38, %v958_v27 }
 0x24c   : > { %v1033_v6 = vadd.f32 %v3014_v37, %v959_v57  ;;  %v1034_v61 = vadd.f32 %v3017_v5, %v960_v20  ;;  %v1035_v22 = vadd.f32 %v3020_v2, %v961_v58  ;;  %v1036_v32 = vadd.f32 %v3029_v13, %v962_v62 }
 0x24d   : > { %3424 = vst [vmem:[#allocation19_spill] sm:$0xff] %v3039_v10  ;;  %v2289_v41 = vpop.eup %2288  ;;  %v1037_v31 = vadd.f32 %v3032_v19, %v963_v9  ;;  %v890_v3 = vmul.f32 %v2287_v15, %v2831_v49  ;;  %v891_v40 = vmul.f32 %v2287_v15, %v2834_v29  ;;  %v892_v53 = vmul.f32 %v2287_v15, %v2837_v50 }
 0x24e   : > { %v893_v56 = vmul.f32 %v2287_v15, %v2848_v16  ;;  %v894_v27 = vmul.f32 %v2287_v15, %v2859_v25  ;;  %v877_v28 = vadd.f32 1e-05, %v873_v55  ;;  %v895_v57 = vmul.f32 %v2287_v15, %v2872_v35 }
 0x24f   : > { %v896_v20 = vmul.f32 %v2287_v15, %v2882_v46  ;;  %v897_v58 = vmul.f32 %v2287_v15, %v2889_v34  ;;  %v898_v62 = vmul.f32 %v2289_v41, %v2864_v12  ;;  %v899_v9 = vmul.f32 %v2289_v41, %v2867_v14 }
 0x250   : > { %v900_v49 = vmul.f32 %v2289_v41, %v2875_v59  ;;  %v901_v29 = vmul.f32 %v2289_v41, %v2894_v11  ;;  %2290 = vrsqrt.f32 %v877_v28  ;;  %v902_v50 = vmul.f32 %v2289_v41, %v2899_v47 }
 0x251   : > { %v903_v16 = vmul.f32 %v2289_v41, %v2915_v33  ;;  %v904_v55 = vmul.f32 %v2289_v41, %v2929_v39  ;;  %v905_v25 = vmul.f32 %v2289_v41, %v2939_v30  ;;  %v964_v35 = vmul.f32 %v2973_v51, %v890_v3 }
 0x252   : > { %v965_v46 = vmul.f32 %v2982_v26, %v891_v40  ;;  %v966_v12 = vmul.f32 %v2979_v21, %v892_v53  ;;  %v967_v14 = vmul.f32 %v2985_v36, %v893_v56  ;;  %v968_v59 = vmul.f32 %v2988_v43, %v894_v27 }
 0x253   : > { %v969_v28 = vmul.f32 %v2991_v7, %v895_v57  ;;  %v970_v34 = vmul.f32 %v3000_v52, %v896_v20  ;;  %v971_v11 = vmul.f32 %v3003_v17, %v897_v58  ;;  %v972_v47 = vmul.f32 %v2973_v51, %v898_v62 }
 0x254   : > { %v973_v33 = vmul.f32 %v2982_v26, %v899_v9  ;;  %v974_v39 = vmul.f32 %v2979_v21, %v900_v49  ;;  %v975_v30 = vmul.f32 %v2985_v36, %v901_v29  ;;  %v976_v15 = vmul.f32 %v2988_v43, %v902_v50 }
 0x255   : > { %v977_v41 = vmul.f32 %v2991_v7, %v903_v16  ;;  %v978_v3 = vmul.f32 %v3000_v52, %v904_v55  ;;  %v979_v40 = vmul.f32 %v3003_v17, %v905_v25  ;;  %v1038_v53 = vadd.f32 %v2976_v60, %v964_v35 }
 0x256   : > { %v1039_v56 = vadd.f32 %v3011_v23, %v965_v46  ;;  %v1040_v27 = vadd.f32 %v3008_v38, %v966_v12  ;;  %v1041_v57 = vadd.f32 %v3014_v37, %v967_v14  ;;  %v1042_v20 = vadd.f32 %v3017_v5, %v968_v59 }
 0x257   : > { %v1043_v58 = vadd.f32 %v3020_v2, %v969_v28  ;;  %v1044_v62 = vadd.f32 %v3029_v13, %v970_v34  ;;  %v1045_v9 = vadd.f32 %v3032_v19, %v971_v11  ;;  %v1046_v49 = vadd.f32 %v2976_v60, %v972_v47 }
 0x258   : > { %v1047_v29 = vadd.f32 %v3011_v23, %v973_v33  ;;  %v1048_v50 = vadd.f32 %v3008_v38, %v974_v39  ;;  %v1049_v16 = vadd.f32 %v3014_v37, %v975_v30  ;;  %v1050_v55 = vadd.f32 %v3017_v5, %v976_v15 }
 0x259   : > { %v1051_v25 = vadd.f32 %v3020_v2, %v977_v41  ;;  %v1052_v35 = vadd.f32 %v3029_v13, %v978_v3  ;;  %v1053_v46 = vadd.f32 %v3032_v19, %v979_v40  ;;  %v1063_v12 = vadd.f32 %v1038_v53, %v1030_v24  ;;  %v3426_v53 = vld [vmem:[#allocation17_spill] sm:$0xff] }
 0x25a   : > { %v1072_v14 = vadd.f32 %v1039_v56, %v1031_v48  ;;  %v1081_v59 = vadd.f32 %v1040_v27, %v1032_v18  ;;  %v1090_v28 = vadd.f32 %v1041_v57, %v1033_v6  ;;  %v1099_v34 = vadd.f32 %v1042_v20, %v1034_v61  ;;  %v3427_v56 = vld [vmem:[#allocation18_spill] sm:$0xff] }
 0x25b   : > { %v1108_v11 = vadd.f32 %v1043_v58, %v1035_v22  ;;  %v1117_v47 = vadd.f32 %v1044_v62, %v1036_v32  ;;  %v1126_v33 = vadd.f32 %v1045_v9, %v1037_v31  ;;  %v1064_v54 = vadd.f32 %v1063_v12, %v1046_v49 }
 0x25c   : > { %v1073_v39 = vadd.f32 %v1072_v14, %v1047_v29  ;;  %v1082_v10 = vadd.f32 %v1081_v59, %v1048_v50  ;;  %v1091_v30 = vadd.f32 %v1090_v28, %v1049_v16  ;;  %v1100_v15 = vadd.f32 %v1099_v34, %v1050_v55 }
 0x25d   : > { %v2291_v37 = vpop.eup %2290  ;;  %v1109_v5 = vadd.f32 %v1108_v11, %v1051_v25  ;;  %v1118_v41 = vadd.f32 %v1117_v47, %v1052_v35  ;;  %v1127_v2 = vadd.f32 %v1126_v33, %v1053_v46 }
 0x25e   : > { %v906_v3 = vmul.f32 %v2291_v37, %v2904_v44  ;;  %v907_v24 = vmul.f32 %v2291_v37, %v2907_v0  ;;  %v908_v18 = vmul.f32 %v2291_v37, %v2912_v8  ;;  %v909_v6 = vmul.f32 %v2291_v37, %v2922_v42 }
 0x25f   : > { %v910_v48 = vmul.f32 %v2291_v37, %v2934_v4  ;;  %v911_v61 = vmul.f32 %v2291_v37, %v2944_v63  ;;  %v912_v22 = vmul.f32 %v2291_v37, %v2951_v45  ;;  %v913_v32 = vmul.f32 %v2291_v37, %v2958_v1  ;;  %v3425_v37 = vld [vmem:[#allocation16_spill] sm:$0xff] }
 0x260   : > { %v980_v31 = vmul.f32 %v2973_v51, %v906_v3  ;;  %v981_v40 = vmul.f32 %v2982_v26, %v907_v24  ;;  %v982_v44 = vmul.f32 %v2979_v21, %v908_v18  ;;  %v983_v0 = vmul.f32 %v2985_v36, %v909_v6 }
 0x261   : > { %v984_v8 = vmul.f32 %v2988_v43, %v910_v48  ;;  %v985_v42 = vmul.f32 %v2991_v7, %v911_v61  ;;  %v986_v4 = vmul.f32 %v3000_v52, %v912_v22  ;;  %v987_v63 = vmul.f32 %v3003_v17, %v913_v32 }
 0x262   : > { %v1054_v45 = vadd.f32 %v2976_v60, %v980_v31  ;;  %v1055_v1 = vadd.f32 %v3011_v23, %v981_v40  ;;  %v1056_v51 = vadd.f32 %v3008_v38, %v982_v44  ;;  %v1057_v26 = vadd.f32 %v3425_v37, %v983_v0 }
 0x263   : > { %v1058_v21 = vadd.f32 %v3426_v53, %v984_v8  ;;  %v1059_v36 = vadd.f32 %v3427_v56, %v985_v42  ;;  %v1060_v43 = vadd.f32 %v3029_v13, %v986_v4  ;;  %v1061_v7 = vadd.f32 %v3032_v19, %v987_v63  ;;  %v3428_v56 = vld [vmem:[#allocation19_spill] sm:$0xff] }
 0x264   : > { %v1065_v27 = vadd.f32 %v1064_v54, %v1054_v45  ;;  %v1074_v52 = vadd.f32 %v1073_v39, %v1055_v1  ;;  %v1083_v57 = vadd.f32 %v1082_v10, %v1056_v51  ;;  %v1092_v17 = vadd.f32 %v1091_v30, %v1057_v26 }
 0x265   : > { %v1101_v20 = vadd.f32 %v1100_v15, %v1058_v21  ;;  %v1110_v60 = vadd.f32 %v1109_v5, %v1059_v36  ;;  %v1119_v58 = vadd.f32 %v1118_v41, %v1060_v43  ;;  %v1128_v23 = vadd.f32 %v1127_v2, %v1061_v7 }
 0x266   : > { %v1066_v62 = vrot.slane %v1065_v27, 4  ;;  %v1075_v38 = vrot.slane %v1074_v52, 4  ;;  %v1084_v9 = vrot.slane %v1083_v57, 4  ;;  %v1093_v49 = vrot.slane %v1092_v17, 4 }
 0x267   : > { %v1102_v29 = vrot.slane %v1101_v20, 4  ;;  %v1111_v50 = vrot.slane %v1110_v60, 4  ;;  %v1120_v16 = vrot.slane %v1119_v58, 4  ;;  %v1129_v55 = vrot.slane %v1128_v23, 4 }
 0x268   : > { %v1067_v25 = vadd.f32 %v1066_v62, %v1065_v27  ;;  %v1076_v13 = vadd.f32 %v1075_v38, %v1074_v52  ;;  %v1085_v35 = vadd.f32 %v1084_v9, %v1083_v57  ;;  %v1094_v19 = vadd.f32 %v1093_v49, %v1092_v17 }
 0x269   : > { %v1103_v54 = vadd.f32 %v1102_v29, %v1101_v20  ;;  %v1112_v46 = vadd.f32 %v1111_v50, %v1110_v60  ;;  %v1121_v10 = vadd.f32 %v1120_v16, %v1119_v58  ;;  %v1130_v12 = vadd.f32 %v1129_v55, %v1128_v23  ;;  %v1062_v60 = vld [vmem:[#allocation2] sm:$0xff] }
 0x26a   : > { %v1068_v14 = vrot.slane %v1067_v25, 2  ;;  %v1077_v5 = vrot.slane %v1076_v13, 2  ;;  %v1086_v59 = vrot.slane %v1085_v35, 2  ;;  %v1095_v2 = vrot.slane %v1094_v19, 2 }
 0x26b   : > { %v1104_v28 = vrot.slane %v1103_v54, 2  ;;  %v1113_v34 = vrot.slane %v1112_v46, 2  ;;  %v1122_v11 = vrot.slane %v1121_v10, 2  ;;  %v1131_v47 = vrot.slane %v1130_v12, 2 }
 0x26c   : > { %v1069_v33 = vadd.f32 %v1068_v14, %v1067_v25  ;;  %v1078_v39 = vadd.f32 %v1077_v5, %v1076_v13  ;;  %v1087_v30 = vadd.f32 %v1086_v59, %v1085_v35  ;;  %v1096_v15 = vadd.f32 %v1095_v2, %v1094_v19 }
 0x26d   : > { %v1105_v41 = vadd.f32 %v1104_v28, %v1103_v54  ;;  %v1114_v3 = vadd.f32 %v1113_v34, %v1112_v46  ;;  %v1123_v24 = vadd.f32 %v1122_v11, %v1121_v10  ;;  %v1132_v18 = vadd.f32 %v1131_v47, %v1130_v12 }
 0x26e   : > { %v1070_v6 = vrot.slane %v1069_v33, 1  ;;  %v1079_v48 = vrot.slane %v1078_v39, 1  ;;  %v1088_v61 = vrot.slane %v1087_v30, 1  ;;  %v1097_v22 = vrot.slane %v1096_v15, 1 }
 0x26f   : > { %v1106_v32 = vrot.slane %v1105_v41, 1  ;;  %v1115_v31 = vrot.slane %v1114_v3, 1  ;;  %v1124_v40 = vrot.slane %v1123_v24, 1  ;;  %v1133_v44 = vrot.slane %v1132_v18, 1 }
 0x270   : > { %v1071_v0 = vadd.f32 %v1070_v6, %v1069_v33  ;;  %v1080_v8 = vadd.f32 %v1079_v48, %v1078_v39  ;;  %v1089_v42 = vadd.f32 %v1088_v61, %v1087_v30  ;;  %v1098_v4 = vadd.f32 %v1097_v22, %v1096_v15 }
 0x271   : > { %v1107_v63 = vadd.f32 %v1106_v32, %v1105_v41  ;;  %v1116_v45 = vadd.f32 %v1115_v31, %v1114_v3  ;;  %v1125_v1 = vadd.f32 %v1124_v40, %v1123_v24  ;;  %v1134_v51 = vadd.f32 %v1133_v44, %v1132_v18 }
 0x272   : > { %v1143_v37 = vcombine.low %v1071_v0, %v1080_v8  ;;  %v1144_v26 = vcombine.low %v1089_v42, %v1098_v4 }
 0x273   : > { %v1145_v53 = vcombine.low %v1107_v63, %v1116_v45  ;;  %v1146_v21 = vcombine.low %v1125_v1, %v1134_v51 }
 0x274   : > { %v1153_v36 = vrot.slane %v1143_v37, %v3428_v56  ;;  %v1160_v43 = vrot.slane %v1144_v26, %v3428_v56 }
 0x275   : > { %v1167_v7 = vrot.slane %v1145_v53, %v3428_v56  ;;  %v1174_v27 = vrot.slane %v1146_v21, %v3428_v56 }
 0x276   : > { %v1175_v52 = vcombine.low %v1153_v36, %v1160_v43 }
 0x277   : > { %v1176_v57 = vcombine.low %v1167_v7, %v1174_v27 }
 0x278   : > { %v1183_v17 = vrot.slane %v1175_v52, %v3428_v56 }
 0x279   : > { %v1190_v20 = vrot.slane %v1176_v57, %v3428_v56 }
 0x27b   : > { %v1191_v58 = vcombine.low %v1183_v17, %v1190_v20  ;;  %1198 = sbr.rel (%p2052_p1) target bundleno = 908 (0x38c), region = 56 }
 0x27d   : > { %v1193_v23 = vadd.f32 %v1191_v58, %v1062_v60 }
 0x27f   : > { %1194 = vst [vmem:[#allocation2] sm:$0xff] %v1193_v23 }
 0x280   : > { %v2292_v62 = vld [vmem:[%s3392_s5 + $0x78] sm:$0xff]   ;;  %v2296_v29 = vld [vmem:[%s3392_s5 + $0x70] sm:$0xff]   ;;  %v2300_v25 = vld [vmem:[%s3392_s5 + $0x68] sm:$0xff]  }
 0x281   : > { %v2293_v38 = vld [vmem:[%s3392_s5 + $0xf8] sm:$0xff]   ;;  %2120 = vmatprep.subr.bf16.mxu0 %v2292_v62  ;;  %v2297_v50 = vld [vmem:[%s3392_s5 + $0xf0] sm:$0xff]   ;;  %v2301_v13 = vld [vmem:[%s3392_s5 + $0xe8] sm:$0xff]  }
 0x282   : > { %v2294_v9 = vld [vmem:[%s3392_s5 + $0x38] sm:$0xff]   ;;  %2142 = vmatprep.subr.bf16.mxu1 %v2293_v38  ;;  %v2298_v16 = vld [vmem:[%s3392_s5 + $0x30] sm:$0xff]   ;;  %v2302_v35 = vld [vmem:[%s3392_s5 + $0x28] sm:$0xff]  }
 0x283   : > { %v2295_v49 = vld [vmem:[%s3392_s5 + $0xb8] sm:$0xff]   ;;  %2121 = vmatpush3.bf16.msra.mxu0 %v2294_v9  ;;  %v2299_v55 = vld [vmem:[%s3392_s5 + $0xb0] sm:$0xff]   ;;  %v2303_v19 = vld [vmem:[%s3392_s5 + $0xa8] sm:$0xff]  }
 0x284   : > { %2143 = vmatpush3.bf16.msra.mxu1 %v2295_v49  ;;  %2122 = vmatprep.subr.bf16.mxu0 %v2296_v29  ;;  %v2304_v54 = vld [vmem:[%s3392_s5 + $0x60] sm:$0xff]   ;;  %v2308_v14 = vld [vmem:[%s3392_s5 + $0x58] sm:$0xff]   ;;  %v2312_v28 = vld [vmem:[%s3392_s5 + $0x50] sm:$0xff]  }
 0x285   : > { %2144 = vmatprep.subr.bf16.mxu1 %v2297_v50  ;;  %v2305_v46 = vld [vmem:[%s3392_s5 + $0xe0] sm:$0xff]   ;;  %v2309_v5 = vld [vmem:[%s3392_s5 + $0xd8] sm:$0xff]   ;;  %v2313_v34 = vld [vmem:[%s3392_s5 + $0xd0] sm:$0xff]  }
 0x286   : > { %v2306_v10 = vld [vmem:[%s3392_s5 + $0x20] sm:$0xff]   ;;  %v2310_v59 = vld [vmem:[%s3392_s5 + $0x18] sm:$0xff]   ;;  %v2314_v11 = vld [vmem:[%s3392_s5 + $0x10] sm:$0xff]  }
 0x287   : > { %2123 = vmatpush3.bf16.msra.mxu0 %v2298_v16  ;;  %v2307_v12 = vld [vmem:[%s3392_s5 + $0xa0] sm:$0xff]   ;;  %v2311_v2 = vld [vmem:[%s3392_s5 + $0x98] sm:$0xff]   ;;  %v2315_v47 = vld [vmem:[%s3392_s5 + $0x90] sm:$0xff]  }
 0x288   : > { %2145 = vmatpush3.bf16.msra.mxu1 %v2299_v55  ;;  %2124 = vmatprep.subr.bf16.mxu0 %v2300_v25  ;;  %v2316_v33 = vld [vmem:[%s3392_s5 + $0x48] sm:$0xff]   ;;  %v2320_v41 = vld [vmem:[%s3392_s5 + $0x40] sm:$0xff]   ;;  %v2324_v61 = vld [vmem:[%s3392_s5 + $0x178] sm:$0xff]  }
 0x289   : > { %2146 = vmatprep.subr.bf16.mxu1 %v2301_v13  ;;  %v2317_v39 = vld [vmem:[%s3392_s5 + $0xc8] sm:$0xff]   ;;  %v2321_v3 = vld [vmem:[%s3392_s5 + $0xc0] sm:$0xff]   ;;  %v2325_v22 = vld [vmem:[%s3392_s5 + $0x1f8] sm:$0xff]  }
 0x28a   : > { %v2318_v30 = vld [vmem:[%s3392_s5 + $0x8] sm:$0xff]   ;;  %v2322_v24 = vld [vmem:[%s3392_s5] sm:$0xff]   ;;  %v3431_v0 = vld [vmem:[#allocation9_spill] sm:$0xff] }
 0x28b   : > { %2125 = vmatpush3.bf16.msra.mxu0 %v2302_v35  ;;  %v2319_v15 = vld [vmem:[%s3392_s5 + $0x88] sm:$0xff]   ;;  %v2323_v18 = vld [vmem:[%s3392_s5 + $0x80] sm:$0xff]   ;;  %v2326_v63 = vld [vmem:[%s3392_s5 + $0x138] sm:$0xff]  }
 0x28c   : > { %2147 = vmatpush3.bf16.msra.mxu1 %v2303_v19  ;;  %2126 = vmatprep.subr.bf16.mxu0 %v2304_v54  ;;  %v1199_v6 = vld [vmem:[#allocation2] sm:$0xff]  ;;  %v3429_v32 = vld [vmem:[#allocation8_spill] sm:$0xff]  ;;  %v2327_v45 = vld [vmem:[%s3392_s5 + $0x1b8] sm:$0xff]  }
 0x28d   : > { %2148 = vmatprep.subr.bf16.mxu1 %v2305_v46  ;;  %v3222_v48 = vmul.f32 0.015625, %v1199_v6  ;;  %v3430_v40 = vld [vmem:[#allocation11_spill] sm:$0xff]  ;;  %v3432_v42 = vld [vmem:[#allocation10_spill] sm:$0xff]  ;;  %v2328_v43 = vld [vmem:[%s3392_s5 + $0x170] sm:$0xff]  }
 0x28e   : > { %v3433_v1 = vld [vmem:[#allocation14_spill] sm:$0xff]  ;;  %v3434_v37 = vld [vmem:[#allocation15_spill] sm:$0xff]  ;;  %v2329_v7 = vld [vmem:[%s3392_s5 + $0x1f0] sm:$0xff]  }
 0x28f   : > { %2127 = vmatpush3.bf16.msra.mxu0 %v2306_v10  ;;  %v1209_v31 = vrot.slane %v3222_v48, %v3429_v32  ;;  %v1217_v44 = vrot.slane %v3222_v48, %v3430_v40  ;;  %v1205_v8 = vrot.slane %v3222_v48, %v3431_v0  ;;  %v1213_v4 = vrot.slane %v3222_v48, %v3432_v42  ;;  %v2330_v27 = vld [vmem:[%s3392_s5 + $0x130] sm:$0xff]   ;;  %v2332_v20 = vld [vmem:[%s3392_s5 + $0x168] sm:$0xff]   ;;  %v2336_v62 = vld [vmem:[%s3392_s5 + $0x160] sm:$0xff]  }
 0x290   : > { %2149 = vmatpush3.bf16.msra.mxu1 %v2307_v12  ;;  %2128 = vmatprep.subr.bf16.mxu0 %v2308_v14  ;;  %v1225_v51 = vrot.slane %v3222_v48, %v3433_v1  ;;  %v1233_v26 = vrot.slane %v3222_v48, %v3434_v37  ;;  %v2331_v17 = vld [vmem:[%s3392_s5 + $0x1b0] sm:$0xff]   ;;  %v2333_v60 = vld [vmem:[%s3392_s5 + $0x1e8] sm:$0xff]   ;;  %v2337_v38 = vld [vmem:[%s3392_s5 + $0x1e0] sm:$0xff]  }
 0x291   : > { %2150 = vmatprep.subr.bf16.mxu1 %v2309_v5  ;;  %v1243_v53 = vpack.c.bf16 %v1209_v31, %v1209_v31  ;;  %v1245_v21 = vpack.c.bf16 %v1217_v44, %v1217_v44  ;;  %v1242_v56 = vpack.c.bf16 %v1205_v8, %v1205_v8  ;;  %v1244_v36 = vpack.c.bf16 %v1213_v4, %v1213_v4  ;;  %v2334_v58 = vld [vmem:[%s3392_s5 + $0x128] sm:$0xff]   ;;  %v2338_v9 = vld [vmem:[%s3392_s5 + $0x120] sm:$0xff]   ;;  %v2340_v29 = vld [vmem:[%s3392_s5 + $0x158] sm:$0xff]  }
 0x292   : > { %v1247_v52 = vpack.c.bf16 %v1225_v51, %v1225_v51  ;;  %v1249_v57 = vpack.c.bf16 %v1233_v26, %v1233_v26  ;;  %v2335_v23 = vld [vmem:[%s3392_s5 + $0x1a8] sm:$0xff]   ;;  %v2339_v49 = vld [vmem:[%s3392_s5 + $0x1a0] sm:$0xff]   ;;  %v2341_v50 = vld [vmem:[%s3392_s5 + $0x1d8] sm:$0xff]  }
 0x293   : > { %2129 = vmatpush3.bf16.msra.mxu0 %v2310_v59  ;;  %1795 = vmatprep.mubr.bf16.mxu0 %v1243_v53  ;;  %v2342_v16 = vld [vmem:[%s3392_s5 + $0x118] sm:$0xff]   ;;  %v2344_v25 = vld [vmem:[%s3392_s5 + $0x150] sm:$0xff]   ;;  %v2348_v54 = vld [vmem:[%s3392_s5 + $0x148] sm:$0xff]  }
 0x294   : > { %2151 = vmatpush3.bf16.msra.mxu1 %v2311_v2  ;;  %2130 = vmatprep.subr.bf16.mxu0 %v2312_v28  ;;  %v2343_v55 = vld [vmem:[%s3392_s5 + $0x198] sm:$0xff]   ;;  %v2345_v13 = vld [vmem:[%s3392_s5 + $0x1d0] sm:$0xff]   ;;  %v2349_v46 = vld [vmem:[%s3392_s5 + $0x1c8] sm:$0xff]  }
 0x295   : > { %2152 = vmatprep.subr.bf16.mxu1 %v2313_v34  ;;  %1835 = vmatprep.mubr.bf16.mxu1 %v1245_v21  ;;  %v2346_v35 = vld [vmem:[%s3392_s5 + $0x110] sm:$0xff]   ;;  %v2350_v10 = vld [vmem:[%s3392_s5 + $0x108] sm:$0xff]   ;;  %v2352_v14 = vld [vmem:[%s3392_s5 + $0x140] sm:$0xff]  }
 0x296   : > { %v2347_v19 = vld [vmem:[%s3392_s5 + $0x190] sm:$0xff]   ;;  %v2351_v12 = vld [vmem:[%s3392_s5 + $0x188] sm:$0xff]   ;;  %v2353_v5 = vld [vmem:[%s3392_s5 + $0x1c0] sm:$0xff]  }
 0x297   : > { %2131 = vmatpush3.bf16.msra.mxu0 %v2314_v11  ;;  %v3435_v59 = vld [vmem:[#allocation12_spill] sm:$0xff]  ;;  %v3436_v28 = vld [vmem:[#allocation13_spill] sm:$0xff]  ;;  %v2354_v11 = vld [vmem:[%s3392_s5 + $0x100] sm:$0xff]  }
 0x298   : > { %2153 = vmatpush3.bf16.msra.mxu1 %v2315_v47  ;;  %2132 = vmatprep.subr.bf16.mxu0 %v2316_v33  ;;  %v1221_v2 = vrot.slane %v3222_v48, %v3435_v59  ;;  %v1229_v34 = vrot.slane %v3222_v48, %v3436_v28  ;;  %v2355_v47 = vld [vmem:[%s3392_s5 + $0x180] sm:$0xff]  }
 0x299   : > { %2154 = vmatprep.subr.bf16.mxu1 %v2317_v39 }
 0x29a   : > { %v1246_v33 = vpack.c.bf16 %v1221_v2, %v1221_v2  ;;  %v1248_v39 = vpack.c.bf16 %v1229_v34, %v1229_v34 }
 0x29b   : > { %2133 = vmatpush3.bf16.msra.mxu0 %v2318_v30 }
 0x29c   : > { %2155 = vmatpush3.bf16.msra.mxu1 %v2319_v15  ;;  %2134 = vmatprep.subr.bf16.mxu0 %v2320_v41 }
 0x29d   : > { %2156 = vmatprep.subr.bf16.mxu1 %v2321_v3 }
 0x29f   : > { %2135 = vmatpush3.bf16.msra.mxu0 %v2322_v24 }
 0x2a0   : > { %2157 = vmatpush3.bf16.msra.mxu1 %v2323_v18  ;;  %2164 = vmatprep.subr.bf16.mxu0 %v2324_v61 }
 0x2a1   : > { %2186 = vmatprep.subr.bf16.mxu1 %v2325_v22  ;;  %v1378_v22 = vld [vmem:[%s3393_s6] sm:$0x1] }
 0x2a2   : > { %1796 = vmatmul.mubr.bf16.vlgmr.msra.gmra.mxu0 %v1242_v56 }
 0x2a3   : > { %1836 = vmatmul.mubr.bf16.vlgmr.msra.gmra.mxu1 %v1244_v36  ;;  %2165 = vmatpush3.bf16.msra.mxu0 %v2326_v63 }
 0x2a4   : > { %2187 = vmatpush3.bf16.msra.mxu1 %v2327_v45  ;;  %2166 = vmatprep.subr.bf16.mxu0 %v2328_v43 }
 0x2a5   : > { %2188 = vmatprep.subr.bf16.mxu1 %v2329_v7  ;;  %1875 = vmatprep.mubr.bf16.mxu0 %v1247_v52 }
 0x2a6   : > { %1915 = vmatprep.mubr.bf16.mxu1 %v1249_v57 }
 0x2a7   : > { %2167 = vmatpush3.bf16.msra.mxu0 %v2330_v27 }
 0x2a8   : > { %2189 = vmatpush3.bf16.msra.mxu1 %v2331_v17  ;;  %2168 = vmatprep.subr.bf16.mxu0 %v2332_v20 }
 0x2a9   : > { %2190 = vmatprep.subr.bf16.mxu1 %v2333_v60 }
 0x2ab   : > { %2169 = vmatpush3.bf16.msra.mxu0 %v2334_v58 }
 0x2ac   : > { %2191 = vmatpush3.bf16.msra.mxu1 %v2335_v23  ;;  %2170 = vmatprep.subr.bf16.mxu0 %v2336_v62 }
 0x2ad   : > { %2192 = vmatprep.subr.bf16.mxu1 %v2337_v38 }
 0x2af   : > { %2171 = vmatpush3.bf16.msra.mxu0 %v2338_v9 }
 0x2b0   : > { %2193 = vmatpush3.bf16.msra.mxu1 %v2339_v49  ;;  %2172 = vmatprep.subr.bf16.mxu0 %v2340_v29 }
 0x2b1   : > { %2194 = vmatprep.subr.bf16.mxu1 %v2341_v50 }
 0x2b3   : > { %2173 = vmatpush3.bf16.msra.mxu0 %v2342_v16 }
 0x2b4   : > { %2195 = vmatpush3.bf16.msra.mxu1 %v2343_v55  ;;  %2174 = vmatprep.subr.bf16.mxu0 %v2344_v25 }
 0x2b5   : > { %2196 = vmatprep.subr.bf16.mxu1 %v2345_v13 }
 0x2b7   : > { %2175 = vmatpush3.bf16.msra.mxu0 %v2346_v35 }
 0x2b8   : > { %2197 = vmatpush3.bf16.msra.mxu1 %v2347_v19  ;;  %2176 = vmatprep.subr.bf16.mxu0 %v2348_v54 }
 0x2b9   : > { %2198 = vmatprep.subr.bf16.mxu1 %v2349_v46 }
 0x2bb   : > { %2177 = vmatpush3.bf16.msra.mxu0 %v2350_v10 }
 0x2bc   : > { %2199 = vmatpush3.bf16.msra.mxu1 %v2351_v12  ;;  %2178 = vmatprep.subr.bf16.mxu0 %v2352_v14 }
 0x2bd   : > { %2200 = vmatprep.subr.bf16.mxu1 %v2353_v5 }
 0x2bf   : > { %2179 = vmatpush3.bf16.msra.mxu0 %v2354_v11 }
 0x2c0   : > { %2201 = vmatpush3.bf16.msra.mxu1 %v2355_v47 }
 0x2c2   : > { %1876 = vmatmul.mubr.bf16.vlgmr.msra.gmra.mxu0 %v1246_v33 }
 0x2c3   : > { %1916 = vmatmul.mubr.bf16.vlgmr.msra.gmra.mxu1 %v1248_v39 }
 0x362   : > { %v2136_v30 = vpop.f32.mrf.mxu0 }
 0x363   : > { %v2158_v15 = vpop.f32.mrf.mxu1 }
 0x364   : > { %v2137_v41 = vpop.f32.mrf.mxu0 }
 0x365   : > { %v2159_v3 = vpop.f32.mrf.mxu1  ;;  %v2138_v61 = vadd.f32 %v2137_v41, %v2136_v30 }
 0x366   : > { %v2139_v24 = vpop.f32.mrf.mxu0  ;;  %v2160_v31 = vadd.f32 %v2159_v3, %v2158_v15 }
 0x367   : > { %v2161_v18 = vpop.f32.mrf.mxu1  ;;  %v1798_v32 = vadd.f32 %v2138_v61, %v1378_v22 }
 0x368   : > { %v2140_v6 = vpop.f32.mrf.mxu0 }
 0x369   : > { %v2162_v48 = vpop.f32.mrf.mxu1  ;;  %v1838_v42 = vadd.f32 %v2160_v31, %v1798_v32 }
 0x382   : > { %v2180_v40 = vpop.f32.mrf.mxu0 }
 0x383   : > { %v2202_v44 = vpop.f32.mrf.mxu1 }
 0x384   : > { %v2181_v0 = vpop.f32.mrf.mxu0 }
 0x385   : > { %v2203_v8 = vpop.f32.mrf.mxu1  ;;  %v2182_v4 = vadd.f32 %v2181_v0, %v2180_v40 }
 0x386   : > { %v2183_v63 = vpop.f32.mrf.mxu0  ;;  %v2204_v51 = vadd.f32 %v2203_v8, %v2202_v44 }
 0x387   : > { %v2205_v45 = vpop.f32.mrf.mxu1  ;;  %v1878_v1 = vadd.f32 %v2182_v4, %v1838_v42 }
 0x388   : > { %v2184_v37 = vpop.f32.mrf.mxu0 }
 0x389   : > { %v2206_v26 = vpop.f32.mrf.mxu1  ;;  %v1918_v53 = vadd.f32 %v2204_v51, %v1878_v1 }
 0x38b   : > { %1923 = vst [vmem:[%s2574_s16] sm:$0x1] %v1918_v53 }
 0x38c PF: > { %s2117_s12 = sshll.u32 %s2436_s28, 4  ;;  %s1937_s22 = sshll.u32 %s2574_s16, 4  ;;  %s1938_s22 = int_to_ptr.vmem [resolvable:$true] %s1937_s22 }
 0x38d   : > { %s1935_s21 = scalar_lea.hbm %s3394_s7, %s2117_s12  ;;  %s3437_s18 = sand.u32 1, %s2424_s25  }
 0x38e   : > { %s1925_s23 = scalar_lea.sflag [#allocation4], %s3437_s18  ;;  %s2356_s15 = scalar_lea.vmem %s1938_s22, 16 }
 0x38f   : > { %p2357_p2 = scmp.ne.s32.totalorder %s1938_s22, %s2356_s15  ;;  %s2453_s9 = smov [#allocation3]  }
 0x390   : > { %s2360_s10 = sshll.u32 %s2453_s9, 4  ;;  %s2361_s10 = int_to_ptr.vmem [resolvable:$false] %s2360_s10 }
 0x391   : > { %p2358_p4 = pnand %p2357_p2, %p2543_p3  ;;  %s2362_s27 = scalar_lea.vmem %s2361_s10, 32 }
 0x392   : > { %p2363_p6 = scmp.lt.s32.totalorder %s1938_s22, %s2361_s10  ;;  %p2364_p7 = scmp.lt.s32.totalorder %s2362_s27, %s2356_s15 }
 0x393   : > { %p2359_p5 = pneg %p2358_p4 }
 0x394   : > { %p2365_p8 = por %p2364_p7, %p2363_p6 }
 0x396   : > { %p2366_p10 = pnand %p2365_p8, %p2359_p5 }
 0x398   : > { %2369 = shalt.err (!%p2366_p10)
}
 0x399   : > { %s2370_s28 = scalar_lea.hbm %s1935_s21, 16  ;;  %s2374_s12 = scalar_lea.hbm %s3394_s7, 32 }
 0x39a   : > { %p2371_p11 = scmp.ne.s32.totalorder %s1935_s21, %s2370_s28  ;;  %p2375_p0 = scmp.lt.s32.totalorder %s1935_s21, %s3394_s7 }
 0x39b   : > { %p2376_p1 = scmp.lt.s32.totalorder %s2374_s12, %s2370_s28 }
 0x39c   : > { %p2372_p12 = pnand %p2371_p11, %p2543_p3 }
 0x39d   : > { %p2377_p2 = por %p2376_p1, %p2375_p0 }
 0x39e   : > { %p2373_p13 = pneg %p2372_p12 }
 0x3a0   : > { %p2378_p4 = pnand %p2377_p2, %p2373_p13 }
 0x3a2   : > { %2381 = shalt.err (!%p2378_p4)
}
 0x3a3   : > { %2208 = dma.vmem_to_hbm [thread:$0]  (%p2543_p3), %s1938_s22, 16, %s1935_s21, %s1925_s23  }
 0x3a4 PF: > { %p2214_p5 = scmp.ge.s32.totalorder %s2448_s8, 2  ;;  %s1949_s18 = sand.u32 1, %s2420_s24  }
 0x3a5   : > { %s1950_s15 = scalar_lea.sflag [#allocation4], %s1949_s18 }
 0x3a6   : > { %p2211_p6 = pnand %p2214_p5, %p2553_p9 }
 0x3a8   : > { %p2212_p7 = pneg %p2211_p6 }
 0x3aa   : > { %2415 = dma.done.wait (%p2212_p7), %s1950_s15, 16  }
 0x3ab   : > { %2417 = vsyncadd (%p2212_p7), %s1950_s15, 4294967280  ;;  %s20_s8 = sadd.s32 1, %s2448_s8   ;;  %s3438_s13 = sld [smem:[#allocation6_spill]] }
 0x3ac   : > { %p17_p8 = scmp.ge.s32.totalorder %s20_s8, 6   ;;  %s3439_s21 = sld [smem:[#allocation7_spill]] }
 0x3ad   : > { %s3440_s24 = smov %s2424_s25  ;;  %s3441_s25 = smov %s2428_s26 }
 0x3ae   : > { %s3442_s26 = smov %s2561_s17  ;;  %s3443_s27 = smov %s2440_s29 }
 0x3af   : > { %s3444_s28 = smov %s2444_s30  ;;  %19 = sbr.rel (!%p17_p8) target bundleno = 5 (0x5), region = 91 }
 0x3b1   : > { %s3445_s29 = smov %s3438_s13 }
 0x3b2   : > { %s3446_s30 = smov %s3439_s21 }
 0x3b4   :  { %1954 = vsyncpa [#allocation4], 1 }
 0x3b5   :  { %1956 = vsyncpa [#allocation4 + $0x1], 1 }

</bundles_post_ra>
